<compile_context>
chip_gen: v7x
topology: tpu7x:2x2x1
jax: 0.10.0
libtpu: 0.0.40
codegen_flags: <defaults>
</compile_context>

<pallas_src>
import jax
import jax.numpy as jnp
from jax.experimental import pallas as pl
from jax.experimental.pallas import tpu as pltpu

_LANE = 128


def _cdiv(a, b):
    return (a + b - 1) // b


def blob_mlp_kernel(x_ref, w1_ref, b1_ref, w2_ref, b2_ref, w3_ref, b3_ref, o_ref):
    """Feature-major MLP: batch on the lane axis, all layers as VPU broadcast FMAs.

    x_ref : (in_f, tb)  f32 VMEM  -- batch tile on lanes (tb % 128 == 0)
    w*_ref: flat f32 SMEM, row-major [fan_in, fan_out]
    b*_ref: flat f32 SMEM, [fan_out]
    o_ref : (out_f, tb) f32 VMEM  -- compact, lane-dense logits
    """
    in_f = x_ref.shape[0]
    hidden = b1_ref.shape[0]
    out_f = o_ref.shape[0]

    def dense(planes, w_ref, b_ref, n_in, n_out, relu):
        outs = []
        for j in range(n_out):
            # Start from the first FMA; add the bias once at the end.
            acc = planes[0] * w_ref[j]                       # k = 0 term
            for k in range(1, n_in):
                acc = acc + planes[k] * w_ref[k * n_out + j]
            acc = acc + b_ref[j]
            outs.append(jnp.maximum(acc, 0.0) if relu else acc)
        return outs

    # Each plane is (1, tb): 128/128 lanes used per vreg, pure VPU work.
    x_planes = [x_ref[k:k + 1, :] for k in range(in_f)]
    h1 = dense(x_planes, w1_ref, b1_ref, in_f, hidden, relu=True)      # Linear(2->8)+ReLU
    h2 = dense(h1, w2_ref, b2_ref, hidden, hidden, relu=True)          # Linear(8->8)+ReLU
    logits = dense(h2, w3_ref, b3_ref, hidden, out_f, relu=False)      # Linear(8->4)

    # Compact, lane-dense store: out_f rows of tb lanes each (16 B/sample).
    for j in range(out_f):
        o_ref[j:j + 1, :] = logits[j]


def blob_model_forward(x, params, *, block_batch=4096):
    """Forward pass of BlobModel. x: (batch, in_features) float32."""
    w1, b1, w2, b2, w3, b3 = params
    batch, in_f = x.shape
    hidden = w1.shape[1]
    out_f = w3.shape[1]

    # --- batch tile on the lane axis (multiples of 128 lanes) ---
    b_lanes = _cdiv(batch, _LANE)
    tb_lanes = max(1, min(block_batch // _LANE, b_lanes))
    # If the whole batch would fit in one grid step but there is enough work for
    # two, split it so both TensorCores get a step on v7x (harmless on v5e/v6e).
    if tb_lanes >= b_lanes and b_lanes >= 2:
        tb_lanes = _cdiv(b_lanes, 2)
    steps = _cdiv(b_lanes, tb_lanes)
    tb = tb_lanes * _LANE
    b_pad = steps * tb

    # Feature-major input (in_f, batch), padded only on the lane axis (8 B/sample).
    xT = jnp.transpose(x)
    if b_pad != batch:
        xT = jnp.pad(xT, ((0, 0), (0, b_pad - batch)))

    # Weights / biases as flat f32 scalars in SMEM (tiny; loaded once).
    smem = pl.BlockSpec(memory_space=pltpu.MemorySpace.SMEM)

    outT = pl.pallas_call(
        blob_mlp_kernel,
        out_shape=jax.ShapeDtypeStruct((out_f, b_pad), jnp.float32),
        grid=(steps,),
        in_specs=[
            pl.BlockSpec((in_f, tb), lambda i: (0, i)),   # x: tiled over batch lanes
            smem, smem, smem, smem, smem, smem,           # w1,b1,w2,b2,w3,b3
        ],
        out_specs=pl.BlockSpec((out_f, tb), lambda i: (0, i)),
        compiler_params=pltpu.CompilerParams(
            dimension_semantics=("parallel",)),           # shard batch tiles across TCs (v7x)
    )(xT,
      w1.reshape(-1), b1.reshape(-1),
      w2.reshape(-1), b2.reshape(-1),
      w3.reshape(-1), b3.reshape(-1))

    # Compact (out_f, batch) -> (batch, out_f): only 16 B/sample touched.
    return jnp.transpose(outT[:, :batch])


def init_params(key, input_features, output_features, hidden_units):
    """Deterministic init matching nn.Linear's shapes (uniform +/- 1/sqrt(fan_in))."""
    ks = jax.random.split(key, 6)

    def linear(kw, kb, fan_in, fan_out):
        bound = 1.0 / (fan_in ** 0.5)
        w = jax.random.uniform(kw, (fan_in, fan_out), jnp.float32, -bound, bound)
        b = jax.random.uniform(kb, (1, fan_out), jnp.float32, -bound, bound)
        return w, b

    w1, b1 = linear(ks[0], ks[1], input_features, hidden_units)
    w2, b2 = linear(ks[2], ks[3], hidden_units, hidden_units)
    w3, b3 = linear(ks[4], ks[5], hidden_units, output_features)
    return (w1, b1, w2, b2, w3, b3)


def _reference(x, params):
    w1, b1, w2, b2, w3, b3 = params
    hi = jax.lax.Precision.HIGHEST
    h = jnp.maximum(jnp.dot(x, w1, precision=hi) + b1, 0.0)
    h = jnp.maximum(jnp.dot(h, w2, precision=hi) + b2, 0.0)
    return jnp.dot(h, w3, precision=hi) + b3


if __name__ == "__main__":
    # Blob classification setup: 2 input features, 4 output classes, 8 hidden units.
    INPUT_FEATURES = 2
    OUTPUT_FEATURES = 4
    HIDDEN_UNITS = 8
    BATCH = 8

    key = jax.random.PRNGKey(0)
    k_x, k_p, k_x2 = jax.random.split(key, 3)
    params = init_params(k_p, INPUT_FEATURES, OUTPUT_FEATURES, HIDDEN_UNITS)

    # Small test (single grid step, batch < 128 -> one 128-lane tile).
    x = jax.random.normal(k_x, (BATCH, INPUT_FEATURES), dtype=jnp.float32)
    out = blob_model_forward(x, params)
    jax.block_until_ready(out)
    ref = _reference(x, params)
    assert out.shape == (BATCH, OUTPUT_FEATURES)
    assert jnp.allclose(out, ref, atol=1e-5, rtol=1e-5)

    # Larger batch exercising multiple grid steps + lane padding of the tail tile.
    x2 = jax.random.normal(k_x2, (600, INPUT_FEATURES), dtype=jnp.float32)
    out2 = blob_model_forward(x2, params)
    jax.block_until_ready(out2)
    ref2 = _reference(x2, params)
    assert out2.shape == (600, OUTPUT_FEATURES)
    assert jnp.allclose(out2, ref2, atol=1e-5, rtol=1e-5)

    print("KERNEL_OK")
</pallas_src>

<mosaic_0001>
module attributes {stable_mosaic.version = 11 : i64} {
  func.func @blob_mlp_kernel(%arg0: i32, %arg1: memref<2x128xf32, #tpu.memory_space<vmem>>, %arg2: memref<16xf32, #tpu.memory_space<smem>>, %arg3: memref<8xf32, #tpu.memory_space<smem>>, %arg4: memref<64xf32, #tpu.memory_space<smem>>, %arg5: memref<8xf32, #tpu.memory_space<smem>>, %arg6: memref<32xf32, #tpu.memory_space<smem>>, %arg7: memref<4xf32, #tpu.memory_space<smem>>, %arg8: memref<4x128xf32, #tpu.memory_space<vmem>>) attributes {dimension_semantics = [#tpu.dimension_semantics<parallel>], iteration_bounds = array<i64: 1>, scalar_prefetch = 0 : i64, scratch_operands = 0 : i64, tpu.core_type = #tpu.core_type<tc>, window_params = [{transform_indices = @transform_0, window_bounds = array<i64: 2, 128>}, {transform_indices = @transform_1, window_bounds = array<i64: 16>}, {transform_indices = @transform_2, window_bounds = array<i64: 8>}, {transform_indices = @transform_3, window_bounds = array<i64: 64>}, {transform_indices = @transform_4, window_bounds = array<i64: 8>}, {transform_indices = @transform_5, window_bounds = array<i64: 32>}, {transform_indices = @transform_6, window_bounds = array<i64: 4>}, {transform_indices = @transform_7, window_bounds = array<i64: 4, 128>}]} {
    %c0 = arith.constant 0 : index
    %c0_0 = arith.constant 0 : index
    %0 = vector.load %arg1[%c0, %c0_0] : memref<2x128xf32, #tpu.memory_space<vmem>>, vector<1x128xf32>
    %c1 = arith.constant 1 : index
    %c0_1 = arith.constant 0 : index
    %1 = vector.load %arg1[%c1, %c0_1] : memref<2x128xf32, #tpu.memory_space<vmem>>, vector<1x128xf32>
    %c0_2 = arith.constant 0 : index
    %2 = memref.load %arg2[%c0_2] : memref<16xf32, #tpu.memory_space<smem>>
    %3 = vector.broadcast %2 : f32 to vector<1x128xf32>
    %4 = arith.mulf %0, %3 : vector<1x128xf32>
    %c8 = arith.constant 8 : index
    %5 = memref.load %arg2[%c8] : memref<16xf32, #tpu.memory_space<smem>>
    %6 = vector.broadcast %5 : f32 to vector<1x128xf32>
    %7 = arith.mulf %1, %6 : vector<1x128xf32>
    %8 = arith.addf %4, %7 : vector<1x128xf32>
    %c0_3 = arith.constant 0 : index
    %9 = memref.load %arg3[%c0_3] : memref<8xf32, #tpu.memory_space<smem>>
    %10 = vector.broadcast %9 : f32 to vector<1x128xf32>
    %11 = arith.addf %8, %10 : vector<1x128xf32>
    %cst = arith.constant 0.000000e+00 : f32
    %12 = vector.broadcast %cst : f32 to vector<1x128xf32>
    %13 = arith.maximumf %11, %12 : vector<1x128xf32>
    %c1_4 = arith.constant 1 : index
    %14 = memref.load %arg2[%c1_4] : memref<16xf32, #tpu.memory_space<smem>>
    %15 = vector.broadcast %14 : f32 to vector<1x128xf32>
    %16 = arith.mulf %0, %15 : vector<1x128xf32>
    %c9 = arith.constant 9 : index
    %17 = memref.load %arg2[%c9] : memref<16xf32, #tpu.memory_space<smem>>
    %18 = vector.broadcast %17 : f32 to vector<1x128xf32>
    %19 = arith.mulf %1, %18 : vector<1x128xf32>
    %20 = arith.addf %16, %19 : vector<1x128xf32>
    %c1_5 = arith.constant 1 : index
    %21 = memref.load %arg3[%c1_5] : memref<8xf32, #tpu.memory_space<smem>>
    %22 = vector.broadcast %21 : f32 to vector<1x128xf32>
    %23 = arith.addf %20, %22 : vector<1x128xf32>
    %cst_6 = arith.constant 0.000000e+00 : f32
    %24 = vector.broadcast %cst_6 : f32 to vector<1x128xf32>
    %25 = arith.maximumf %23, %24 : vector<1x128xf32>
    %c2 = arith.constant 2 : index
    %26 = memref.load %arg2[%c2] : memref<16xf32, #tpu.memory_space<smem>>
    %27 = vector.broadcast %26 : f32 to vector<1x128xf32>
    %28 = arith.mulf %0, %27 : vector<1x128xf32>
    %c10 = arith.constant 10 : index
    %29 = memref.load %arg2[%c10] : memref<16xf32, #tpu.memory_space<smem>>
    %30 = vector.broadcast %29 : f32 to vector<1x128xf32>
    %31 = arith.mulf %1, %30 : vector<1x128xf32>
    %32 = arith.addf %28, %31 : vector<1x128xf32>
    %c2_7 = arith.constant 2 : index
    %33 = memref.load %arg3[%c2_7] : memref<8xf32, #tpu.memory_space<smem>>
    %34 = vector.broadcast %33 : f32 to vector<1x128xf32>
    %35 = arith.addf %32, %34 : vector<1x128xf32>
    %cst_8 = arith.constant 0.000000e+00 : f32
    %36 = vector.broadcast %cst_8 : f32 to vector<1x128xf32>
    %37 = arith.maximumf %35, %36 : vector<1x128xf32>
    %c3 = arith.constant 3 : index
    %38 = memref.load %arg2[%c3] : memref<16xf32, #tpu.memory_space<smem>>
    %39 = vector.broadcast %38 : f32 to vector<1x128xf32>
    %40 = arith.mulf %0, %39 : vector<1x128xf32>
    %c11 = arith.constant 11 : index
    %41 = memref.load %arg2[%c11] : memref<16xf32, #tpu.memory_space<smem>>
    %42 = vector.broadcast %41 : f32 to vector<1x128xf32>
    %43 = arith.mulf %1, %42 : vector<1x128xf32>
    %44 = arith.addf %40, %43 : vector<1x128xf32>
    %c3_9 = arith.constant 3 : index
    %45 = memref.load %arg3[%c3_9] : memref<8xf32, #tpu.memory_space<smem>>
    %46 = vector.broadcast %45 : f32 to vector<1x128xf32>
    %47 = arith.addf %44, %46 : vector<1x128xf32>
    %cst_10 = arith.constant 0.000000e+00 : f32
    %48 = vector.broadcast %cst_10 : f32 to vector<1x128xf32>
    %49 = arith.maximumf %47, %48 : vector<1x128xf32>
    %c4 = arith.constant 4 : index
    %50 = memref.load %arg2[%c4] : memref<16xf32, #tpu.memory_space<smem>>
    %51 = vector.broadcast %50 : f32 to vector<1x128xf32>
    %52 = arith.mulf %0, %51 : vector<1x128xf32>
    %c12 = arith.constant 12 : index
    %53 = memref.load %arg2[%c12] : memref<16xf32, #tpu.memory_space<smem>>
    %54 = vector.broadcast %53 : f32 to vector<1x128xf32>
    %55 = arith.mulf %1, %54 : vector<1x128xf32>
    %56 = arith.addf %52, %55 : vector<1x128xf32>
    %c4_11 = arith.constant 4 : index
    %57 = memref.load %arg3[%c4_11] : memref<8xf32, #tpu.memory_space<smem>>
    %58 = vector.broadcast %57 : f32 to vector<1x128xf32>
    %59 = arith.addf %56, %58 : vector<1x128xf32>
    %cst_12 = arith.constant 0.000000e+00 : f32
    %60 = vector.broadcast %cst_12 : f32 to vector<1x128xf32>
    %61 = arith.maximumf %59, %60 : vector<1x128xf32>
    %c5 = arith.constant 5 : index
    %62 = memref.load %arg2[%c5] : memref<16xf32, #tpu.memory_space<smem>>
    %63 = vector.broadcast %62 : f32 to vector<1x128xf32>
    %64 = arith.mulf %0, %63 : vector<1x128xf32>
    %c13 = arith.constant 13 : index
    %65 = memref.load %arg2[%c13] : memref<16xf32, #tpu.memory_space<smem>>
    %66 = vector.broadcast %65 : f32 to vector<1x128xf32>
    %67 = arith.mulf %1, %66 : vector<1x128xf32>
    %68 = arith.addf %64, %67 : vector<1x128xf32>
    %c5_13 = arith.constant 5 : index
    %69 = memref.load %arg3[%c5_13] : memref<8xf32, #tpu.memory_space<smem>>
    %70 = vector.broadcast %69 : f32 to vector<1x128xf32>
    %71 = arith.addf %68, %70 : vector<1x128xf32>
    %cst_14 = arith.constant 0.000000e+00 : f32
    %72 = vector.broadcast %cst_14 : f32 to vector<1x128xf32>
    %73 = arith.maximumf %71, %72 : vector<1x128xf32>
    %c6 = arith.constant 6 : index
    %74 = memref.load %arg2[%c6] : memref<16xf32, #tpu.memory_space<smem>>
    %75 = vector.broadcast %74 : f32 to vector<1x128xf32>
    %76 = arith.mulf %0, %75 : vector<1x128xf32>
    %c14 = arith.constant 14 : index
    %77 = memref.load %arg2[%c14] : memref<16xf32, #tpu.memory_space<smem>>
    %78 = vector.broadcast %77 : f32 to vector<1x128xf32>
    %79 = arith.mulf %1, %78 : vector<1x128xf32>
    %80 = arith.addf %76, %79 : vector<1x128xf32>
    %c6_15 = arith.constant 6 : index
    %81 = memref.load %arg3[%c6_15] : memref<8xf32, #tpu.memory_space<smem>>
    %82 = vector.broadcast %81 : f32 to vector<1x128xf32>
    %83 = arith.addf %80, %82 : vector<1x128xf32>
    %cst_16 = arith.constant 0.000000e+00 : f32
    %84 = vector.broadcast %cst_16 : f32 to vector<1x128xf32>
    %85 = arith.maximumf %83, %84 : vector<1x128xf32>
    %c7 = arith.constant 7 : index
    %86 = memref.load %arg2[%c7] : memref<16xf32, #tpu.memory_space<smem>>
    %87 = vector.broadcast %86 : f32 to vector<1x128xf32>
    %88 = arith.mulf %0, %87 : vector<1x128xf32>
    %c15 = arith.constant 15 : index
    %89 = memref.load %arg2[%c15] : memref<16xf32, #tpu.memory_space<smem>>
    %90 = vector.broadcast %89 : f32 to vector<1x128xf32>
    %91 = arith.mulf %1, %90 : vector<1x128xf32>
    %92 = arith.addf %88, %91 : vector<1x128xf32>
    %c7_17 = arith.constant 7 : index
    %93 = memref.load %arg3[%c7_17] : memref<8xf32, #tpu.memory_space<smem>>
    %94 = vector.broadcast %93 : f32 to vector<1x128xf32>
    %95 = arith.addf %92, %94 : vector<1x128xf32>
    %cst_18 = arith.constant 0.000000e+00 : f32
    %96 = vector.broadcast %cst_18 : f32 to vector<1x128xf32>
    %97 = arith.maximumf %95, %96 : vector<1x128xf32>
    %c0_19 = arith.constant 0 : index
    %98 = memref.load %arg4[%c0_19] : memref<64xf32, #tpu.memory_space<smem>>
    %99 = vector.broadcast %98 : f32 to vector<1x128xf32>
    %100 = arith.mulf %13, %99 : vector<1x128xf32>
    %c8_20 = arith.constant 8 : index
    %101 = memref.load %arg4[%c8_20] : memref<64xf32, #tpu.memory_space<smem>>
    %102 = vector.broadcast %101 : f32 to vector<1x128xf32>
    %103 = arith.mulf %25, %102 : vector<1x128xf32>
    %104 = arith.addf %100, %103 : vector<1x128xf32>
    %c16 = arith.constant 16 : index
    %105 = memref.load %arg4[%c16] : memref<64xf32, #tpu.memory_space<smem>>
    %106 = vector.broadcast %105 : f32 to vector<1x128xf32>
    %107 = arith.mulf %37, %106 : vector<1x128xf32>
    %108 = arith.addf %104, %107 : vector<1x128xf32>
    %c24 = arith.constant 24 : index
    %109 = memref.load %arg4[%c24] : memref<64xf32, #tpu.memory_space<smem>>
    %110 = vector.broadcast %109 : f32 to vector<1x128xf32>
    %111 = arith.mulf %49, %110 : vector<1x128xf32>
    %112 = arith.addf %108, %111 : vector<1x128xf32>
    %c32 = arith.constant 32 : index
    %113 = memref.load %arg4[%c32] : memref<64xf32, #tpu.memory_space<smem>>
    %114 = vector.broadcast %113 : f32 to vector<1x128xf32>
    %115 = arith.mulf %61, %114 : vector<1x128xf32>
    %116 = arith.addf %112, %115 : vector<1x128xf32>
    %c40 = arith.constant 40 : index
    %117 = memref.load %arg4[%c40] : memref<64xf32, #tpu.memory_space<smem>>
    %118 = vector.broadcast %117 : f32 to vector<1x128xf32>
    %119 = arith.mulf %73, %118 : vector<1x128xf32>
    %120 = arith.addf %116, %119 : vector<1x128xf32>
    %c48 = arith.constant 48 : index
    %121 = memref.load %arg4[%c48] : memref<64xf32, #tpu.memory_space<smem>>
    %122 = vector.broadcast %121 : f32 to vector<1x128xf32>
    %123 = arith.mulf %85, %122 : vector<1x128xf32>
    %124 = arith.addf %120, %123 : vector<1x128xf32>
    %c56 = arith.constant 56 : index
    %125 = memref.load %arg4[%c56] : memref<64xf32, #tpu.memory_space<smem>>
    %126 = vector.broadcast %125 : f32 to vector<1x128xf32>
    %127 = arith.mulf %97, %126 : vector<1x128xf32>
    %128 = arith.addf %124, %127 : vector<1x128xf32>
    %c0_21 = arith.constant 0 : index
    %129 = memref.load %arg5[%c0_21] : memref<8xf32, #tpu.memory_space<smem>>
    %130 = vector.broadcast %129 : f32 to vector<1x128xf32>
    %131 = arith.addf %128, %130 : vector<1x128xf32>
    %cst_22 = arith.constant 0.000000e+00 : f32
    %132 = vector.broadcast %cst_22 : f32 to vector<1x128xf32>
    %133 = arith.maximumf %131, %132 : vector<1x128xf32>
    %c1_23 = arith.constant 1 : index
    %134 = memref.load %arg4[%c1_23] : memref<64xf32, #tpu.memory_space<smem>>
    %135 = vector.broadcast %134 : f32 to vector<1x128xf32>
    %136 = arith.mulf %13, %135 : vector<1x128xf32>
    %c9_24 = arith.constant 9 : index
    %137 = memref.load %arg4[%c9_24] : memref<64xf32, #tpu.memory_space<smem>>
    %138 = vector.broadcast %137 : f32 to vector<1x128xf32>
    %139 = arith.mulf %25, %138 : vector<1x128xf32>
    %140 = arith.addf %136, %139 : vector<1x128xf32>
    %c17 = arith.constant 17 : index
    %141 = memref.load %arg4[%c17] : memref<64xf32, #tpu.memory_space<smem>>
    %142 = vector.broadcast %141 : f32 to vector<1x128xf32>
    %143 = arith.mulf %37, %142 : vector<1x128xf32>
    %144 = arith.addf %140, %143 : vector<1x128xf32>
    %c25 = arith.constant 25 : index
    %145 = memref.load %arg4[%c25] : memref<64xf32, #tpu.memory_space<smem>>
    %146 = vector.broadcast %145 : f32 to vector<1x128xf32>
    %147 = arith.mulf %49, %146 : vector<1x128xf32>
    %148 = arith.addf %144, %147 : vector<1x128xf32>
    %c33 = arith.constant 33 : index
    %149 = memref.load %arg4[%c33] : memref<64xf32, #tpu.memory_space<smem>>
    %150 = vector.broadcast %149 : f32 to vector<1x128xf32>
    %151 = arith.mulf %61, %150 : vector<1x128xf32>
    %152 = arith.addf %148, %151 : vector<1x128xf32>
    %c41 = arith.constant 41 : index
    %153 = memref.load %arg4[%c41] : memref<64xf32, #tpu.memory_space<smem>>
    %154 = vector.broadcast %153 : f32 to vector<1x128xf32>
    %155 = arith.mulf %73, %154 : vector<1x128xf32>
    %156 = arith.addf %152, %155 : vector<1x128xf32>
    %c49 = arith.constant 49 : index
    %157 = memref.load %arg4[%c49] : memref<64xf32, #tpu.memory_space<smem>>
    %158 = vector.broadcast %157 : f32 to vector<1x128xf32>
    %159 = arith.mulf %85, %158 : vector<1x128xf32>
    %160 = arith.addf %156, %159 : vector<1x128xf32>
    %c57 = arith.constant 57 : index
    %161 = memref.load %arg4[%c57] : memref<64xf32, #tpu.memory_space<smem>>
    %162 = vector.broadcast %161 : f32 to vector<1x128xf32>
    %163 = arith.mulf %97, %162 : vector<1x128xf32>
    %164 = arith.addf %160, %163 : vector<1x128xf32>
    %c1_25 = arith.constant 1 : index
    %165 = memref.load %arg5[%c1_25] : memref<8xf32, #tpu.memory_space<smem>>
    %166 = vector.broadcast %165 : f32 to vector<1x128xf32>
    %167 = arith.addf %164, %166 : vector<1x128xf32>
    %cst_26 = arith.constant 0.000000e+00 : f32
    %168 = vector.broadcast %cst_26 : f32 to vector<1x128xf32>
    %169 = arith.maximumf %167, %168 : vector<1x128xf32>
    %c2_27 = arith.constant 2 : index
    %170 = memref.load %arg4[%c2_27] : memref<64xf32, #tpu.memory_space<smem>>
    %171 = vector.broadcast %170 : f32 to vector<1x128xf32>
    %172 = arith.mulf %13, %171 : vector<1x128xf32>
    %c10_28 = arith.constant 10 : index
    %173 = memref.load %arg4[%c10_28] : memref<64xf32, #tpu.memory_space<smem>>
    %174 = vector.broadcast %173 : f32 to vector<1x128xf32>
    %175 = arith.mulf %25, %174 : vector<1x128xf32>
    %176 = arith.addf %172, %175 : vector<1x128xf32>
    %c18 = arith.constant 18 : index
    %177 = memref.load %arg4[%c18] : memref<64xf32, #tpu.memory_space<smem>>
    %178 = vector.broadcast %177 : f32 to vector<1x128xf32>
    %179 = arith.mulf %37, %178 : vector<1x128xf32>
    %180 = arith.addf %176, %179 : vector<1x128xf32>
    %c26 = arith.constant 26 : index
    %181 = memref.load %arg4[%c26] : memref<64xf32, #tpu.memory_space<smem>>
    %182 = vector.broadcast %181 : f32 to vector<1x128xf32>
    %183 = arith.mulf %49, %182 : vector<1x128xf32>
    %184 = arith.addf %180, %183 : vector<1x128xf32>
    %c34 = arith.constant 34 : index
    %185 = memref.load %arg4[%c34] : memref<64xf32, #tpu.memory_space<smem>>
    %186 = vector.broadcast %185 : f32 to vector<1x128xf32>
    %187 = arith.mulf %61, %186 : vector<1x128xf32>
    %188 = arith.addf %184, %187 : vector<1x128xf32>
    %c42 = arith.constant 42 : index
    %189 = memref.load %arg4[%c42] : memref<64xf32, #tpu.memory_space<smem>>
    %190 = vector.broadcast %189 : f32 to vector<1x128xf32>
    %191 = arith.mulf %73, %190 : vector<1x128xf32>
    %192 = arith.addf %188, %191 : vector<1x128xf32>
    %c50 = arith.constant 50 : index
    %193 = memref.load %arg4[%c50] : memref<64xf32, #tpu.memory_space<smem>>
    %194 = vector.broadcast %193 : f32 to vector<1x128xf32>
    %195 = arith.mulf %85, %194 : vector<1x128xf32>
    %196 = arith.addf %192, %195 : vector<1x128xf32>
    %c58 = arith.constant 58 : index
    %197 = memref.load %arg4[%c58] : memref<64xf32, #tpu.memory_space<smem>>
    %198 = vector.broadcast %197 : f32 to vector<1x128xf32>
    %199 = arith.mulf %97, %198 : vector<1x128xf32>
    %200 = arith.addf %196, %199 : vector<1x128xf32>
    %c2_29 = arith.constant 2 : index
    %201 = memref.load %arg5[%c2_29] : memref<8xf32, #tpu.memory_space<smem>>
    %202 = vector.broadcast %201 : f32 to vector<1x128xf32>
    %203 = arith.addf %200, %202 : vector<1x128xf32>
    %cst_30 = arith.constant 0.000000e+00 : f32
    %204 = vector.broadcast %cst_30 : f32 to vector<1x128xf32>
    %205 = arith.maximumf %203, %204 : vector<1x128xf32>
    %c3_31 = arith.constant 3 : index
    %206 = memref.load %arg4[%c3_31] : memref<64xf32, #tpu.memory_space<smem>>
    %207 = vector.broadcast %206 : f32 to vector<1x128xf32>
    %208 = arith.mulf %13, %207 : vector<1x128xf32>
    %c11_32 = arith.constant 11 : index
    %209 = memref.load %arg4[%c11_32] : memref<64xf32, #tpu.memory_space<smem>>
    %210 = vector.broadcast %209 : f32 to vector<1x128xf32>
    %211 = arith.mulf %25, %210 : vector<1x128xf32>
    %212 = arith.addf %208, %211 : vector<1x128xf32>
    %c19 = arith.constant 19 : index
    %213 = memref.load %arg4[%c19] : memref<64xf32, #tpu.memory_space<smem>>
    %214 = vector.broadcast %213 : f32 to vector<1x128xf32>
    %215 = arith.mulf %37, %214 : vector<1x128xf32>
    %216 = arith.addf %212, %215 : vector<1x128xf32>
    %c27 = arith.constant 27 : index
    %217 = memref.load %arg4[%c27] : memref<64xf32, #tpu.memory_space<smem>>
    %218 = vector.broadcast %217 : f32 to vector<1x128xf32>
    %219 = arith.mulf %49, %218 : vector<1x128xf32>
    %220 = arith.addf %216, %219 : vector<1x128xf32>
    %c35 = arith.constant 35 : index
    %221 = memref.load %arg4[%c35] : memref<64xf32, #tpu.memory_space<smem>>
    %222 = vector.broadcast %221 : f32 to vector<1x128xf32>
    %223 = arith.mulf %61, %222 : vector<1x128xf32>
    %224 = arith.addf %220, %223 : vector<1x128xf32>
    %c43 = arith.constant 43 : index
    %225 = memref.load %arg4[%c43] : memref<64xf32, #tpu.memory_space<smem>>
    %226 = vector.broadcast %225 : f32 to vector<1x128xf32>
    %227 = arith.mulf %73, %226 : vector<1x128xf32>
    %228 = arith.addf %224, %227 : vector<1x128xf32>
    %c51 = arith.constant 51 : index
    %229 = memref.load %arg4[%c51] : memref<64xf32, #tpu.memory_space<smem>>
    %230 = vector.broadcast %229 : f32 to vector<1x128xf32>
    %231 = arith.mulf %85, %230 : vector<1x128xf32>
    %232 = arith.addf %228, %231 : vector<1x128xf32>
    %c59 = arith.constant 59 : index
    %233 = memref.load %arg4[%c59] : memref<64xf32, #tpu.memory_space<smem>>
    %234 = vector.broadcast %233 : f32 to vector<1x128xf32>
    %235 = arith.mulf %97, %234 : vector<1x128xf32>
    %236 = arith.addf %232, %235 : vector<1x128xf32>
    %c3_33 = arith.constant 3 : index
    %237 = memref.load %arg5[%c3_33] : memref<8xf32, #tpu.memory_space<smem>>
    %238 = vector.broadcast %237 : f32 to vector<1x128xf32>
    %239 = arith.addf %236, %238 : vector<1x128xf32>
    %cst_34 = arith.constant 0.000000e+00 : f32
    %240 = vector.broadcast %cst_34 : f32 to vector<1x128xf32>
    %241 = arith.maximumf %239, %240 : vector<1x128xf32>
    %c4_35 = arith.constant 4 : index
    %242 = memref.load %arg4[%c4_35] : memref<64xf32, #tpu.memory_space<smem>>
    %243 = vector.broadcast %242 : f32 to vector<1x128xf32>
    %244 = arith.mulf %13, %243 : vector<1x128xf32>
    %c12_36 = arith.constant 12 : index
    %245 = memref.load %arg4[%c12_36] : memref<64xf32, #tpu.memory_space<smem>>
    %246 = vector.broadcast %245 : f32 to vector<1x128xf32>
    %247 = arith.mulf %25, %246 : vector<1x128xf32>
    %248 = arith.addf %244, %247 : vector<1x128xf32>
    %c20 = arith.constant 20 : index
    %249 = memref.load %arg4[%c20] : memref<64xf32, #tpu.memory_space<smem>>
    %250 = vector.broadcast %249 : f32 to vector<1x128xf32>
    %251 = arith.mulf %37, %250 : vector<1x128xf32>
    %252 = arith.addf %248, %251 : vector<1x128xf32>
    %c28 = arith.constant 28 : index
    %253 = memref.load %arg4[%c28] : memref<64xf32, #tpu.memory_space<smem>>
    %254 = vector.broadcast %253 : f32 to vector<1x128xf32>
    %255 = arith.mulf %49, %254 : vector<1x128xf32>
    %256 = arith.addf %252, %255 : vector<1x128xf32>
    %c36 = arith.constant 36 : index
    %257 = memref.load %arg4[%c36] : memref<64xf32, #tpu.memory_space<smem>>
    %258 = vector.broadcast %257 : f32 to vector<1x128xf32>
    %259 = arith.mulf %61, %258 : vector<1x128xf32>
    %260 = arith.addf %256, %259 : vector<1x128xf32>
    %c44 = arith.constant 44 : index
    %261 = memref.load %arg4[%c44] : memref<64xf32, #tpu.memory_space<smem>>
    %262 = vector.broadcast %261 : f32 to vector<1x128xf32>
    %263 = arith.mulf %73, %262 : vector<1x128xf32>
    %264 = arith.addf %260, %263 : vector<1x128xf32>
    %c52 = arith.constant 52 : index
    %265 = memref.load %arg4[%c52] : memref<64xf32, #tpu.memory_space<smem>>
    %266 = vector.broadcast %265 : f32 to vector<1x128xf32>
    %267 = arith.mulf %85, %266 : vector<1x128xf32>
    %268 = arith.addf %264, %267 : vector<1x128xf32>
    %c60 = arith.constant 60 : index
    %269 = memref.load %arg4[%c60] : memref<64xf32, #tpu.memory_space<smem>>
    %270 = vector.broadcast %269 : f32 to vector<1x128xf32>
    %271 = arith.mulf %97, %270 : vector<1x128xf32>
    %272 = arith.addf %268, %271 : vector<1x128xf32>
    %c4_37 = arith.constant 4 : index
    %273 = memref.load %arg5[%c4_37] : memref<8xf32, #tpu.memory_space<smem>>
    %274 = vector.broadcast %273 : f32 to vector<1x128xf32>
    %275 = arith.addf %272, %274 : vector<1x128xf32>
    %cst_38 = arith.constant 0.000000e+00 : f32
    %276 = vector.broadcast %cst_38 : f32 to vector<1x128xf32>
    %277 = arith.maximumf %275, %276 : vector<1x128xf32>
    %c5_39 = arith.constant 5 : index
    %278 = memref.load %arg4[%c5_39] : memref<64xf32, #tpu.memory_space<smem>>
    %279 = vector.broadcast %278 : f32 to vector<1x128xf32>
    %280 = arith.mulf %13, %279 : vector<1x128xf32>
    %c13_40 = arith.constant 13 : index
    %281 = memref.load %arg4[%c13_40] : memref<64xf32, #tpu.memory_space<smem>>
    %282 = vector.broadcast %281 : f32 to vector<1x128xf32>
    %283 = arith.mulf %25, %282 : vector<1x128xf32>
    %284 = arith.addf %280, %283 : vector<1x128xf32>
    %c21 = arith.constant 21 : index
    %285 = memref.load %arg4[%c21] : memref<64xf32, #tpu.memory_space<smem>>
    %286 = vector.broadcast %285 : f32 to vector<1x128xf32>
    %287 = arith.mulf %37, %286 : vector<1x128xf32>
    %288 = arith.addf %284, %287 : vector<1x128xf32>
    %c29 = arith.constant 29 : index
    %289 = memref.load %arg4[%c29] : memref<64xf32, #tpu.memory_space<smem>>
    %290 = vector.broadcast %289 : f32 to vector<1x128xf32>
    %291 = arith.mulf %49, %290 : vector<1x128xf32>
    %292 = arith.addf %288, %291 : vector<1x128xf32>
    %c37 = arith.constant 37 : index
    %293 = memref.load %arg4[%c37] : memref<64xf32, #tpu.memory_space<smem>>
    %294 = vector.broadcast %293 : f32 to vector<1x128xf32>
    %295 = arith.mulf %61, %294 : vector<1x128xf32>
    %296 = arith.addf %292, %295 : vector<1x128xf32>
    %c45 = arith.constant 45 : index
    %297 = memref.load %arg4[%c45] : memref<64xf32, #tpu.memory_space<smem>>
    %298 = vector.broadcast %297 : f32 to vector<1x128xf32>
    %299 = arith.mulf %73, %298 : vector<1x128xf32>
    %300 = arith.addf %296, %299 : vector<1x128xf32>
    %c53 = arith.constant 53 : index
    %301 = memref.load %arg4[%c53] : memref<64xf32, #tpu.memory_space<smem>>
    %302 = vector.broadcast %301 : f32 to vector<1x128xf32>
    %303 = arith.mulf %85, %302 : vector<1x128xf32>
    %304 = arith.addf %300, %303 : vector<1x128xf32>
    %c61 = arith.constant 61 : index
    %305 = memref.load %arg4[%c61] : memref<64xf32, #tpu.memory_space<smem>>
    %306 = vector.broadcast %305 : f32 to vector<1x128xf32>
    %307 = arith.mulf %97, %306 : vector<1x128xf32>
    %308 = arith.addf %304, %307 : vector<1x128xf32>
    %c5_41 = arith.constant 5 : index
    %309 = memref.load %arg5[%c5_41] : memref<8xf32, #tpu.memory_space<smem>>
    %310 = vector.broadcast %309 : f32 to vector<1x128xf32>
    %311 = arith.addf %308, %310 : vector<1x128xf32>
    %cst_42 = arith.constant 0.000000e+00 : f32
    %312 = vector.broadcast %cst_42 : f32 to vector<1x128xf32>
    %313 = arith.maximumf %311, %312 : vector<1x128xf32>
    %c6_43 = arith.constant 6 : index
    %314 = memref.load %arg4[%c6_43] : memref<64xf32, #tpu.memory_space<smem>>
    %315 = vector.broadcast %314 : f32 to vector<1x128xf32>
    %316 = arith.mulf %13, %315 : vector<1x128xf32>
    %c14_44 = arith.constant 14 : index
    %317 = memref.load %arg4[%c14_44] : memref<64xf32, #tpu.memory_space<smem>>
    %318 = vector.broadcast %317 : f32 to vector<1x128xf32>
    %319 = arith.mulf %25, %318 : vector<1x128xf32>
    %320 = arith.addf %316, %319 : vector<1x128xf32>
    %c22 = arith.constant 22 : index
    %321 = memref.load %arg4[%c22] : memref<64xf32, #tpu.memory_space<smem>>
    %322 = vector.broadcast %321 : f32 to vector<1x128xf32>
    %323 = arith.mulf %37, %322 : vector<1x128xf32>
    %324 = arith.addf %320, %323 : vector<1x128xf32>
    %c30 = arith.constant 30 : index
    %325 = memref.load %arg4[%c30] : memref<64xf32, #tpu.memory_space<smem>>
    %326 = vector.broadcast %325 : f32 to vector<1x128xf32>
    %327 = arith.mulf %49, %326 : vector<1x128xf32>
    %328 = arith.addf %324, %327 : vector<1x128xf32>
    %c38 = arith.constant 38 : index
    %329 = memref.load %arg4[%c38] : memref<64xf32, #tpu.memory_space<smem>>
    %330 = vector.broadcast %329 : f32 to vector<1x128xf32>
    %331 = arith.mulf %61, %330 : vector<1x128xf32>
    %332 = arith.addf %328, %331 : vector<1x128xf32>
    %c46 = arith.constant 46 : index
    %333 = memref.load %arg4[%c46] : memref<64xf32, #tpu.memory_space<smem>>
    %334 = vector.broadcast %333 : f32 to vector<1x128xf32>
    %335 = arith.mulf %73, %334 : vector<1x128xf32>
    %336 = arith.addf %332, %335 : vector<1x128xf32>
    %c54 = arith.constant 54 : index
    %337 = memref.load %arg4[%c54] : memref<64xf32, #tpu.memory_space<smem>>
    %338 = vector.broadcast %337 : f32 to vector<1x128xf32>
    %339 = arith.mulf %85, %338 : vector<1x128xf32>
    %340 = arith.addf %336, %339 : vector<1x128xf32>
    %c62 = arith.constant 62 : index
    %341 = memref.load %arg4[%c62] : memref<64xf32, #tpu.memory_space<smem>>
    %342 = vector.broadcast %341 : f32 to vector<1x128xf32>
    %343 = arith.mulf %97, %342 : vector<1x128xf32>
    %344 = arith.addf %340, %343 : vector<1x128xf32>
    %c6_45 = arith.constant 6 : index
    %345 = memref.load %arg5[%c6_45] : memref<8xf32, #tpu.memory_space<smem>>
    %346 = vector.broadcast %345 : f32 to vector<1x128xf32>
    %347 = arith.addf %344, %346 : vector<1x128xf32>
    %cst_46 = arith.constant 0.000000e+00 : f32
    %348 = vector.broadcast %cst_46 : f32 to vector<1x128xf32>
    %349 = arith.maximumf %347, %348 : vector<1x128xf32>
    %c7_47 = arith.constant 7 : index
    %350 = memref.load %arg4[%c7_47] : memref<64xf32, #tpu.memory_space<smem>>
    %351 = vector.broadcast %350 : f32 to vector<1x128xf32>
    %352 = arith.mulf %13, %351 : vector<1x128xf32>
    %c15_48 = arith.constant 15 : index
    %353 = memref.load %arg4[%c15_48] : memref<64xf32, #tpu.memory_space<smem>>
    %354 = vector.broadcast %353 : f32 to vector<1x128xf32>
    %355 = arith.mulf %25, %354 : vector<1x128xf32>
    %356 = arith.addf %352, %355 : vector<1x128xf32>
    %c23 = arith.constant 23 : index
    %357 = memref.load %arg4[%c23] : memref<64xf32, #tpu.memory_space<smem>>
    %358 = vector.broadcast %357 : f32 to vector<1x128xf32>
    %359 = arith.mulf %37, %358 : vector<1x128xf32>
    %360 = arith.addf %356, %359 : vector<1x128xf32>
    %c31 = arith.constant 31 : index
    %361 = memref.load %arg4[%c31] : memref<64xf32, #tpu.memory_space<smem>>
    %362 = vector.broadcast %361 : f32 to vector<1x128xf32>
    %363 = arith.mulf %49, %362 : vector<1x128xf32>
    %364 = arith.addf %360, %363 : vector<1x128xf32>
    %c39 = arith.constant 39 : index
    %365 = memref.load %arg4[%c39] : memref<64xf32, #tpu.memory_space<smem>>
    %366 = vector.broadcast %365 : f32 to vector<1x128xf32>
    %367 = arith.mulf %61, %366 : vector<1x128xf32>
    %368 = arith.addf %364, %367 : vector<1x128xf32>
    %c47 = arith.constant 47 : index
    %369 = memref.load %arg4[%c47] : memref<64xf32, #tpu.memory_space<smem>>
    %370 = vector.broadcast %369 : f32 to vector<1x128xf32>
    %371 = arith.mulf %73, %370 : vector<1x128xf32>
    %372 = arith.addf %368, %371 : vector<1x128xf32>
    %c55 = arith.constant 55 : index
    %373 = memref.load %arg4[%c55] : memref<64xf32, #tpu.memory_space<smem>>
    %374 = vector.broadcast %373 : f32 to vector<1x128xf32>
    %375 = arith.mulf %85, %374 : vector<1x128xf32>
    %376 = arith.addf %372, %375 : vector<1x128xf32>
    %c63 = arith.constant 63 : index
    %377 = memref.load %arg4[%c63] : memref<64xf32, #tpu.memory_space<smem>>
    %378 = vector.broadcast %377 : f32 to vector<1x128xf32>
    %379 = arith.mulf %97, %378 : vector<1x128xf32>
    %380 = arith.addf %376, %379 : vector<1x128xf32>
    %c7_49 = arith.constant 7 : index
    %381 = memref.load %arg5[%c7_49] : memref<8xf32, #tpu.memory_space<smem>>
    %382 = vector.broadcast %381 : f32 to vector<1x128xf32>
    %383 = arith.addf %380, %382 : vector<1x128xf32>
    %cst_50 = arith.constant 0.000000e+00 : f32
    %384 = vector.broadcast %cst_50 : f32 to vector<1x128xf32>
    %385 = arith.maximumf %383, %384 : vector<1x128xf32>
    %c0_51 = arith.constant 0 : index
    %386 = memref.load %arg6[%c0_51] : memref<32xf32, #tpu.memory_space<smem>>
    %387 = vector.broadcast %386 : f32 to vector<1x128xf32>
    %388 = arith.mulf %133, %387 : vector<1x128xf32>
    %c4_52 = arith.constant 4 : index
    %389 = memref.load %arg6[%c4_52] : memref<32xf32, #tpu.memory_space<smem>>
    %390 = vector.broadcast %389 : f32 to vector<1x128xf32>
    %391 = arith.mulf %169, %390 : vector<1x128xf32>
    %392 = arith.addf %388, %391 : vector<1x128xf32>
    %c8_53 = arith.constant 8 : index
    %393 = memref.load %arg6[%c8_53] : memref<32xf32, #tpu.memory_space<smem>>
    %394 = vector.broadcast %393 : f32 to vector<1x128xf32>
    %395 = arith.mulf %205, %394 : vector<1x128xf32>
    %396 = arith.addf %392, %395 : vector<1x128xf32>
    %c12_54 = arith.constant 12 : index
    %397 = memref.load %arg6[%c12_54] : memref<32xf32, #tpu.memory_space<smem>>
    %398 = vector.broadcast %397 : f32 to vector<1x128xf32>
    %399 = arith.mulf %241, %398 : vector<1x128xf32>
    %400 = arith.addf %396, %399 : vector<1x128xf32>
    %c16_55 = arith.constant 16 : index
    %401 = memref.load %arg6[%c16_55] : memref<32xf32, #tpu.memory_space<smem>>
    %402 = vector.broadcast %401 : f32 to vector<1x128xf32>
    %403 = arith.mulf %277, %402 : vector<1x128xf32>
    %404 = arith.addf %400, %403 : vector<1x128xf32>
    %c20_56 = arith.constant 20 : index
    %405 = memref.load %arg6[%c20_56] : memref<32xf32, #tpu.memory_space<smem>>
    %406 = vector.broadcast %405 : f32 to vector<1x128xf32>
    %407 = arith.mulf %313, %406 : vector<1x128xf32>
    %408 = arith.addf %404, %407 : vector<1x128xf32>
    %c24_57 = arith.constant 24 : index
    %409 = memref.load %arg6[%c24_57] : memref<32xf32, #tpu.memory_space<smem>>
    %410 = vector.broadcast %409 : f32 to vector<1x128xf32>
    %411 = arith.mulf %349, %410 : vector<1x128xf32>
    %412 = arith.addf %408, %411 : vector<1x128xf32>
    %c28_58 = arith.constant 28 : index
    %413 = memref.load %arg6[%c28_58] : memref<32xf32, #tpu.memory_space<smem>>
    %414 = vector.broadcast %413 : f32 to vector<1x128xf32>
    %415 = arith.mulf %385, %414 : vector<1x128xf32>
    %416 = arith.addf %412, %415 : vector<1x128xf32>
    %c0_59 = arith.constant 0 : index
    %417 = memref.load %arg7[%c0_59] : memref<4xf32, #tpu.memory_space<smem>>
    %418 = vector.broadcast %417 : f32 to vector<1x128xf32>
    %419 = arith.addf %416, %418 : vector<1x128xf32>
    %c1_60 = arith.constant 1 : index
    %420 = memref.load %arg6[%c1_60] : memref<32xf32, #tpu.memory_space<smem>>
    %421 = vector.broadcast %420 : f32 to vector<1x128xf32>
    %422 = arith.mulf %133, %421 : vector<1x128xf32>
    %c5_61 = arith.constant 5 : index
    %423 = memref.load %arg6[%c5_61] : memref<32xf32, #tpu.memory_space<smem>>
    %424 = vector.broadcast %423 : f32 to vector<1x128xf32>
    %425 = arith.mulf %169, %424 : vector<1x128xf32>
    %426 = arith.addf %422, %425 : vector<1x128xf32>
    %c9_62 = arith.constant 9 : index
    %427 = memref.load %arg6[%c9_62] : memref<32xf32, #tpu.memory_space<smem>>
    %428 = vector.broadcast %427 : f32 to vector<1x128xf32>
    %429 = arith.mulf %205, %428 : vector<1x128xf32>
    %430 = arith.addf %426, %429 : vector<1x128xf32>
    %c13_63 = arith.constant 13 : index
    %431 = memref.load %arg6[%c13_63] : memref<32xf32, #tpu.memory_space<smem>>
    %432 = vector.broadcast %431 : f32 to vector<1x128xf32>
    %433 = arith.mulf %241, %432 : vector<1x128xf32>
    %434 = arith.addf %430, %433 : vector<1x128xf32>
    %c17_64 = arith.constant 17 : index
    %435 = memref.load %arg6[%c17_64] : memref<32xf32, #tpu.memory_space<smem>>
    %436 = vector.broadcast %435 : f32 to vector<1x128xf32>
    %437 = arith.mulf %277, %436 : vector<1x128xf32>
    %438 = arith.addf %434, %437 : vector<1x128xf32>
    %c21_65 = arith.constant 21 : index
    %439 = memref.load %arg6[%c21_65] : memref<32xf32, #tpu.memory_space<smem>>
    %440 = vector.broadcast %439 : f32 to vector<1x128xf32>
    %441 = arith.mulf %313, %440 : vector<1x128xf32>
    %442 = arith.addf %438, %441 : vector<1x128xf32>
    %c25_66 = arith.constant 25 : index
    %443 = memref.load %arg6[%c25_66] : memref<32xf32, #tpu.memory_space<smem>>
    %444 = vector.broadcast %443 : f32 to vector<1x128xf32>
    %445 = arith.mulf %349, %444 : vector<1x128xf32>
    %446 = arith.addf %442, %445 : vector<1x128xf32>
    %c29_67 = arith.constant 29 : index
    %447 = memref.load %arg6[%c29_67] : memref<32xf32, #tpu.memory_space<smem>>
    %448 = vector.broadcast %447 : f32 to vector<1x128xf32>
    %449 = arith.mulf %385, %448 : vector<1x128xf32>
    %450 = arith.addf %446, %449 : vector<1x128xf32>
    %c1_68 = arith.constant 1 : index
    %451 = memref.load %arg7[%c1_68] : memref<4xf32, #tpu.memory_space<smem>>
    %452 = vector.broadcast %451 : f32 to vector<1x128xf32>
    %453 = arith.addf %450, %452 : vector<1x128xf32>
    %c2_69 = arith.constant 2 : index
    %454 = memref.load %arg6[%c2_69] : memref<32xf32, #tpu.memory_space<smem>>
    %455 = vector.broadcast %454 : f32 to vector<1x128xf32>
    %456 = arith.mulf %133, %455 : vector<1x128xf32>
    %c6_70 = arith.constant 6 : index
    %457 = memref.load %arg6[%c6_70] : memref<32xf32, #tpu.memory_space<smem>>
    %458 = vector.broadcast %457 : f32 to vector<1x128xf32>
    %459 = arith.mulf %169, %458 : vector<1x128xf32>
    %460 = arith.addf %456, %459 : vector<1x128xf32>
    %c10_71 = arith.constant 10 : index
    %461 = memref.load %arg6[%c10_71] : memref<32xf32, #tpu.memory_space<smem>>
    %462 = vector.broadcast %461 : f32 to vector<1x128xf32>
    %463 = arith.mulf %205, %462 : vector<1x128xf32>
    %464 = arith.addf %460, %463 : vector<1x128xf32>
    %c14_72 = arith.constant 14 : index
    %465 = memref.load %arg6[%c14_72] : memref<32xf32, #tpu.memory_space<smem>>
    %466 = vector.broadcast %465 : f32 to vector<1x128xf32>
    %467 = arith.mulf %241, %466 : vector<1x128xf32>
    %468 = arith.addf %464, %467 : vector<1x128xf32>
    %c18_73 = arith.constant 18 : index
    %469 = memref.load %arg6[%c18_73] : memref<32xf32, #tpu.memory_space<smem>>
    %470 = vector.broadcast %469 : f32 to vector<1x128xf32>
    %471 = arith.mulf %277, %470 : vector<1x128xf32>
    %472 = arith.addf %468, %471 : vector<1x128xf32>
    %c22_74 = arith.constant 22 : index
    %473 = memref.load %arg6[%c22_74] : memref<32xf32, #tpu.memory_space<smem>>
    %474 = vector.broadcast %473 : f32 to vector<1x128xf32>
    %475 = arith.mulf %313, %474 : vector<1x128xf32>
    %476 = arith.addf %472, %475 : vector<1x128xf32>
    %c26_75 = arith.constant 26 : index
    %477 = memref.load %arg6[%c26_75] : memref<32xf32, #tpu.memory_space<smem>>
    %478 = vector.broadcast %477 : f32 to vector<1x128xf32>
    %479 = arith.mulf %349, %478 : vector<1x128xf32>
    %480 = arith.addf %476, %479 : vector<1x128xf32>
    %c30_76 = arith.constant 30 : index
    %481 = memref.load %arg6[%c30_76] : memref<32xf32, #tpu.memory_space<smem>>
    %482 = vector.broadcast %481 : f32 to vector<1x128xf32>
    %483 = arith.mulf %385, %482 : vector<1x128xf32>
    %484 = arith.addf %480, %483 : vector<1x128xf32>
    %c2_77 = arith.constant 2 : index
    %485 = memref.load %arg7[%c2_77] : memref<4xf32, #tpu.memory_space<smem>>
    %486 = vector.broadcast %485 : f32 to vector<1x128xf32>
    %487 = arith.addf %484, %486 : vector<1x128xf32>
    %c3_78 = arith.constant 3 : index
    %488 = memref.load %arg6[%c3_78] : memref<32xf32, #tpu.memory_space<smem>>
    %489 = vector.broadcast %488 : f32 to vector<1x128xf32>
    %490 = arith.mulf %133, %489 : vector<1x128xf32>
    %c7_79 = arith.constant 7 : index
    %491 = memref.load %arg6[%c7_79] : memref<32xf32, #tpu.memory_space<smem>>
    %492 = vector.broadcast %491 : f32 to vector<1x128xf32>
    %493 = arith.mulf %169, %492 : vector<1x128xf32>
    %494 = arith.addf %490, %493 : vector<1x128xf32>
    %c11_80 = arith.constant 11 : index
    %495 = memref.load %arg6[%c11_80] : memref<32xf32, #tpu.memory_space<smem>>
    %496 = vector.broadcast %495 : f32 to vector<1x128xf32>
    %497 = arith.mulf %205, %496 : vector<1x128xf32>
    %498 = arith.addf %494, %497 : vector<1x128xf32>
    %c15_81 = arith.constant 15 : index
    %499 = memref.load %arg6[%c15_81] : memref<32xf32, #tpu.memory_space<smem>>
    %500 = vector.broadcast %499 : f32 to vector<1x128xf32>
    %501 = arith.mulf %241, %500 : vector<1x128xf32>
    %502 = arith.addf %498, %501 : vector<1x128xf32>
    %c19_82 = arith.constant 19 : index
    %503 = memref.load %arg6[%c19_82] : memref<32xf32, #tpu.memory_space<smem>>
    %504 = vector.broadcast %503 : f32 to vector<1x128xf32>
    %505 = arith.mulf %277, %504 : vector<1x128xf32>
    %506 = arith.addf %502, %505 : vector<1x128xf32>
    %c23_83 = arith.constant 23 : index
    %507 = memref.load %arg6[%c23_83] : memref<32xf32, #tpu.memory_space<smem>>
    %508 = vector.broadcast %507 : f32 to vector<1x128xf32>
    %509 = arith.mulf %313, %508 : vector<1x128xf32>
    %510 = arith.addf %506, %509 : vector<1x128xf32>
    %c27_84 = arith.constant 27 : index
    %511 = memref.load %arg6[%c27_84] : memref<32xf32, #tpu.memory_space<smem>>
    %512 = vector.broadcast %511 : f32 to vector<1x128xf32>
    %513 = arith.mulf %349, %512 : vector<1x128xf32>
    %514 = arith.addf %510, %513 : vector<1x128xf32>
    %c31_85 = arith.constant 31 : index
    %515 = memref.load %arg6[%c31_85] : memref<32xf32, #tpu.memory_space<smem>>
    %516 = vector.broadcast %515 : f32 to vector<1x128xf32>
    %517 = arith.mulf %385, %516 : vector<1x128xf32>
    %518 = arith.addf %514, %517 : vector<1x128xf32>
    %c3_86 = arith.constant 3 : index
    %519 = memref.load %arg7[%c3_86] : memref<4xf32, #tpu.memory_space<smem>>
    %520 = vector.broadcast %519 : f32 to vector<1x128xf32>
    %521 = arith.addf %518, %520 : vector<1x128xf32>
    %c0_87 = arith.constant 0 : index
    %c0_88 = arith.constant 0 : index
    %522 = vector.load %arg8[%c0_87, %c0_88] : memref<4x128xf32, #tpu.memory_space<vmem>>, vector<1x128xf32>
    tpu.vector_store %arg8[%c0_87, %c0_88], %419 {strides = array<i32>} : memref<4x128xf32, #tpu.memory_space<vmem>>, vector<1x128xf32>,
    %c1_89 = arith.constant 1 : index
    %c0_90 = arith.constant 0 : index
    %523 = vector.load %arg8[%c1_89, %c0_90] : memref<4x128xf32, #tpu.memory_space<vmem>>, vector<1x128xf32>
    tpu.vector_store %arg8[%c1_89, %c0_90], %453 {strides = array<i32>} : memref<4x128xf32, #tpu.memory_space<vmem>>, vector<1x128xf32>,
    %c2_91 = arith.constant 2 : index
    %c0_92 = arith.constant 0 : index
    %524 = vector.load %arg8[%c2_91, %c0_92] : memref<4x128xf32, #tpu.memory_space<vmem>>, vector<1x128xf32>
    tpu.vector_store %arg8[%c2_91, %c0_92], %487 {strides = array<i32>} : memref<4x128xf32, #tpu.memory_space<vmem>>, vector<1x128xf32>,
    %c3_93 = arith.constant 3 : index
    %c0_94 = arith.constant 0 : index
    %525 = vector.load %arg8[%c3_93, %c0_94] : memref<4x128xf32, #tpu.memory_space<vmem>>, vector<1x128xf32>
    tpu.vector_store %arg8[%c3_93, %c0_94], %521 {strides = array<i32>} : memref<4x128xf32, #tpu.memory_space<vmem>>, vector<1x128xf32>,
    return
  }
  func.func @transform_0(%arg0: i32) -> (i32, i32) {
    %c0_i32 = arith.constant 0 : i32
    %c0_i32_0 = arith.constant 0 : i32
    return %c0_i32, %arg0 : i32, i32
  }
  func.func @transform_1(%arg0: i32) -> i32 {
    %c0_i32 = arith.constant 0 : i32
    %c0_i32_0 = arith.constant 0 : i32
    return %c0_i32 : i32
  }
  func.func @transform_2(%arg0: i32) -> i32 {
    %c0_i32 = arith.constant 0 : i32
    %c0_i32_0 = arith.constant 0 : i32
    return %c0_i32 : i32
  }
  func.func @transform_3(%arg0: i32) -> i32 {
    %c0_i32 = arith.constant 0 : i32
    %c0_i32_0 = arith.constant 0 : i32
    return %c0_i32 : i32
  }
  func.func @transform_4(%arg0: i32) -> i32 {
    %c0_i32 = arith.constant 0 : i32
    %c0_i32_0 = arith.constant 0 : i32
    return %c0_i32 : i32
  }
  func.func @transform_5(%arg0: i32) -> i32 {
    %c0_i32 = arith.constant 0 : i32
    %c0_i32_0 = arith.constant 0 : i32
    return %c0_i32 : i32
  }
  func.func @transform_6(%arg0: i32) -> i32 {
    %c0_i32 = arith.constant 0 : i32
    %c0_i32_0 = arith.constant 0 : i32
    return %c0_i32 : i32
  }
  func.func @transform_7(%arg0: i32) -> (i32, i32) {
    %c0_i32 = arith.constant 0 : i32
    %c0_i32_0 = arith.constant 0 : i32
    return %c0_i32, %arg0 : i32, i32
  }
}

</mosaic_0001>

<bundles_post_ra>
// kernel: tpu_custom_call.1
= control target key start
LH: loop header
LB: loop body
LE: loop exit
PB: predicated region body
PF: predicated region fallthrough
CT: control target
= control target key end

     0   :  { %12 = vsyncpa [#allocation3], 0  ;;  %s1516_s0 = inlined_call_operand.hbm [shape: f32[2,128], index: 0, kind: input, shape index: {}]   ;;  %s1517_s1 = inlined_call_operand.vmem [shape: f32[16], index: 1, kind: input, shape index: {}]   ;;  %s1518_s2 = inlined_call_operand.vmem [shape: f32[8], index: 2, kind: input, shape index: {}]   ;;  %s1519_s3 = inlined_call_operand.vmem [shape: f32[64], index: 3, kind: input, shape index: {}]   ;;  %s1520_s4 = inlined_call_operand.vmem [shape: f32[8], index: 4, kind: input, shape index: {}]   ;;  %s1521_s5 = inlined_call_operand.vmem [shape: f32[32], index: 5, kind: input, shape index: {}]   ;;  %s1522_s6 = inlined_call_operand.vmem [shape: f32[4], index: 6, kind: input, shape index: {}]   ;;  %s1523_s7 = inlined_call_operand.hbm [shape: f32[4,128], index: 7, kind: output, shape index: {}]  }
   0x1   :  { %13 = vsyncpa [#allocation5], 0 }
   0x2   :  { %14 = vsyncpa [#allocation8], 0 }
   0x3   :  { %15 = vsyncpa [#allocation11], 0 }
   0x4   :  { %16 = vsyncpa [#allocation14], 0  ;;  %s44_s26 = sshll.u32 %s1518_s2, 4  ;;  %s45_s26 = int_to_ptr.vmem [resolvable:$true] %s44_s26 }
   0x5   :  { %17 = vsyncpa [#allocation4], 0  ;;  %s64_s29 = sshll.u32 %s1520_s4, 4  ;;  %s773_s30 = scalar_lea.vmem %s45_s26, 16  ;;  %s65_s29 = int_to_ptr.vmem [resolvable:$true] %s64_s29 }
   0x6   :  { %p774_p0 = scmp.ne.s32.totalorder %s45_s26, %s773_s30  ;;  %p778_p1 = scmp.lt.s32.totalorder %s45_s26, %s45_s26 }
   0x7   :  { %p779_p2 = scmp.lt.s32.totalorder %s773_s30, %s773_s30 }
   0x9   :  { %p780_p3 = por %p779_p2, %p778_p1 }
   0xb   :  { %p781_p4 = pnand %p780_p3, %p774_p0 }
   0xd   :  { %784 = shalt.err (!%p781_p4)
}
   0xe   :  { %s901_s8 = smov [#allocation7]   ;;  %s785_s9 = scalar_lea.vmem %s65_s29, 16 }
   0xf   :  { %47 = dma.vmem_to_smem %s45_s26, 16, %s901_s8, [#allocation8]  }
  0x10   :  { %p786_p5 = scmp.ne.s32.totalorder %s65_s29, %s785_s9  ;;  %p790_p6 = scmp.lt.s32.totalorder %s65_s29, %s65_s29 }
  0x11   :  { %p791_p7 = scmp.lt.s32.totalorder %s785_s9, %s785_s9 }
  0x13   :  { %p792_p8 = por %p791_p7, %p790_p6 }
  0x15   :  { %p793_p9 = pnand %p792_p8, %p786_p5 }
  0x17   :  { %796 = shalt.err (!%p793_p9)
}
  0x18   :  { %s902_s2 = smov [#allocation10]   ;;  %s34_s11 = sshll.u32 %s1517_s1, 4  ;;  %s35_s11 = int_to_ptr.vmem [resolvable:$true] %s34_s11 }
  0x19   :  { %67 = dma.vmem_to_smem %s65_s29, 16, %s902_s2, [#allocation11]  }
  0x1a   :  { %s903_s12 = smov [#allocation2]   ;;  %s797_s16 = scalar_lea.hbm %s1516_s0, 32 }
  0x1b   :  { %s24_s13 = sshll.u32 %s903_s12, 4  ;;  %p798_p10 = scmp.ne.s32.totalorder %s1516_s0, %s797_s16  ;;  %s25_s13 = int_to_ptr.vmem [resolvable:$true] %s24_s13 }
  0x1c   :  { %p801_p11 = scmp.lt.u32.totalorder %s797_s16, %s1516_s0 }
  0x1e   :  { %p803_p12 = pnand %p801_p11, %p798_p10 }
  0x20   :  { %806 = shalt.err (!%p803_p12)
}
  0x21   :  { %s807_s21 = scalar_lea.vmem %s25_s13, 32  ;;  %p812_p0 = scmp.lt.s32.totalorder %s25_s13, %s25_s13 }
  0x22   :  { %p808_p13 = scmp.ne.s32.totalorder %s25_s13, %s807_s21  ;;  %p813_p1 = scmp.lt.s32.totalorder %s807_s21, %s807_s21 }
  0x24   :  { %p814_p2 = por %p813_p1, %p812_p0 }
  0x26   :  { %p815_p3 = pnand %p814_p2, %p808_p13 }
  0x28   :  { %818 = shalt.err (!%p815_p3)
}
  0x29   :  { %27 = dma.hbm_to_vmem [thread:$0]  %s1516_s0, 32, %s25_s13, [#allocation3]  }
  0x2a   :  { %s819_s23 = scalar_lea.vmem %s35_s11, 16  ;;  %p824_p5 = scmp.lt.s32.totalorder %s35_s11, %s35_s11 }
  0x2b   :  { %p820_p4 = scmp.ne.s32.totalorder %s35_s11, %s819_s23  ;;  %p825_p6 = scmp.lt.s32.totalorder %s819_s23, %s819_s23 }
  0x2d   :  { %p826_p7 = por %p825_p6, %p824_p5 }
  0x2f   :  { %p827_p8 = pnand %p826_p7, %p820_p4 }
  0x31   :  { %830 = shalt.err (!%p827_p8)
}
  0x32   :  { %s904_s24 = smov [#allocation6]   ;;  %s54_s27 = sshll.u32 %s1519_s3, 4  ;;  %s55_s27 = int_to_ptr.vmem [resolvable:$true] %s54_s27 }
  0x33   :  { %37 = dma.vmem_to_smem %s35_s11, 16, %s904_s24, [#allocation5]  }
  0x34   :  { %s74_s30 = sshll.u32 %s1521_s5, 4  ;;  %s831_s8 = scalar_lea.vmem %s55_s27, 16  ;;  %s75_s30 = int_to_ptr.vmem [resolvable:$true] %s74_s30 }
  0x35   :  { %p832_p9 = scmp.ne.s32.totalorder %s55_s27, %s831_s8  ;;  %p836_p10 = scmp.lt.s32.totalorder %s55_s27, %s55_s27 }
  0x36   :  { %p837_p11 = scmp.lt.s32.totalorder %s831_s8, %s831_s8 }
  0x38   :  { %p838_p12 = por %p837_p11, %p836_p10 }
  0x3a   :  { %p839_p13 = pnand %p838_p12, %p832_p9 }
  0x3c   :  { %842 = shalt.err (!%p839_p13)
}
  0x3d   :  { %s905_s0 = smov [#allocation9]   ;;  %s843_s9 = scalar_lea.vmem %s75_s30, 16 }
  0x3e   :  { %57 = dma.vmem_to_smem %s55_s27, 16, %s905_s0, [#allocation8]  }
  0x3f   :  { %p844_p0 = scmp.ne.s32.totalorder %s75_s30, %s843_s9  ;;  %p848_p1 = scmp.lt.s32.totalorder %s75_s30, %s75_s30 }
  0x40   :  { %p849_p2 = scmp.lt.s32.totalorder %s843_s9, %s843_s9 }
  0x42   :  { %p850_p3 = por %p849_p2, %p848_p1 }
  0x44   :  { %p851_p4 = pnand %p850_p3, %p844_p0 }
  0x46   :  { %854 = shalt.err (!%p851_p4)
}
  0x47   :  { %s906_s3 = smov [#allocation12]   ;;  %s84_s4 = sshll.u32 %s1522_s6, 4  ;;  %s85_s4 = int_to_ptr.vmem [resolvable:$true] %s84_s4 }
  0x48   :  { %77 = dma.vmem_to_smem %s75_s30, 16, %s906_s3, [#allocation11]  }
  0x49   :  { %s855_s10 = scalar_lea.vmem %s85_s4, 16  ;;  %p860_p6 = scmp.lt.s32.totalorder %s85_s4, %s85_s4 }
  0x4a   :  { %p856_p5 = scmp.ne.s32.totalorder %s85_s4, %s855_s10  ;;  %p861_p7 = scmp.lt.s32.totalorder %s855_s10, %s855_s10 }
  0x4c   :  { %p862_p8 = por %p861_p7, %p860_p6 }
  0x4e   :  { %p863_p9 = pnand %p862_p8, %p856_p5 }
  0x50   :  { %866 = shalt.err (!%p863_p9)
}
  0x51   :  { %s907_s11 = smov [#allocation13]  }
  0x52   :  { %87 = dma.vmem_to_smem %s85_s4, 16, %s907_s11, [#allocation14]  }
  0x53   :  { %889 = dma.done.wait [#allocation3], 32  }
  0x54   :  { %890 = vsyncadd [#allocation3], 4294967264 }
  0x55   :  { %891 = dma.done.wait [#allocation5], 16  }
  0x56   :  { %892 = vsyncadd [#allocation5], 4294967280 }
  0x57   :  { %893 = dma.done.wait [#allocation8], 32  }
  0x58   :  { %894 = vsyncadd [#allocation8], 4294967264 }
  0x59   :  { %895 = dma.done.wait [#allocation11], 32  }
  0x5a   :  { %896 = vsyncadd [#allocation11], 4294967264 }
  0x5b   :  { %897 = dma.done.wait [#allocation14], 16  }
  0x5c   :  { %898 = vsyncadd [#allocation14], 4294967280 }
  0x5d   :  { %109 = sfence }
  0x5e   :  { %s112_s6 = sld [smem:[#allocation6]]  ;;  %s640_s14 = sld [smem:[#allocation6 + $0x1]]  ;;  %v983_v0 = vld [vmem:[#allocation2] sm:$0x1]  ;;  %v987_v1 = vld [vmem:[#allocation2 + $0x1] sm:$0x1] }
  0x5f   :  { %s639_s12 = sld [smem:[#allocation6 + $0x8]]  ;;  %s641_s15 = sld [smem:[#allocation6 + $0x9]] }
  0x60   :  { %s979_s13 = sld [smem:[#allocation7]]  ;;  %s981_s16 = sld [smem:[#allocation7 + $0x1]] }
  0x61   :  { %s643_s17 = sld [smem:[#allocation6 + $0x2]]  ;;  %s989_s20 = sld [smem:[#allocation6 + $0x3]] }
  0x62   :  { %s644_s18 = sld [smem:[#allocation6 + $0xa]]  ;;  %s991_s21 = sld [smem:[#allocation6 + $0xb]] }
  0x63   :  { %s985_s19 = sld [smem:[#allocation7 + $0x2]]  ;;  %s993_s1 = sld [smem:[#allocation7 + $0x3]] }
  0x64   :  { %v113_v2 = vstv %s112_s6  ;;  %s995_s22 = sld [smem:[#allocation6 + $0x4]]  ;;  %v124_v7 = vstv %s640_s14  ;;  %s1004_s25 = sld [smem:[#allocation6 + $0x5]] }
  0x65   :  { %v114_v3 = vmul.f32 %v113_v2, %v983_v0  ;;  %v116_v4 = vstv %s639_s12  ;;  %s998_s23 = sld [smem:[#allocation6 + $0xc]]  ;;  %v127_v8 = vstv %s641_s15  ;;  %s1006_s26 = sld [smem:[#allocation6 + $0xd]]  ;;  %v125_v9 = vmul.f32 %v124_v7, %v983_v0 }
  0x66   :  { %s1000_s24 = sld [smem:[#allocation7 + $0x4]]  ;;  %v117_v5 = vmul.f32 %v116_v4, %v987_v1  ;;  %v120_v6 = vstv %s979_s13  ;;  %v128_v10 = vmul.f32 %v127_v8, %v987_v1  ;;  %v131_v11 = vstv %s981_s16  ;;  %s1011_s27 = sld [smem:[#allocation7 + $0x5]] }
  0x67   :  { %v135_v12 = vstv %s643_s17  ;;  %s1013_s28 = sld [smem:[#allocation6 + $0x6]]  ;;  %v146_v19 = vstv %s989_s20  ;;  %s1024_s8 = sld [smem:[#allocation6 + $0x7]] }
  0x68   :  { %v118_v13 = vadd.f32 %v117_v5, %v114_v3  ;;  %v136_v14 = vmul.f32 %v135_v12, %v983_v0  ;;  %v138_v15 = vstv %s644_s18  ;;  %s1017_s29 = sld [smem:[#allocation6 + $0xe]]  ;;  %v129_v17 = vadd.f32 %v128_v10, %v125_v9  ;;  %s1029_s0 = sld [smem:[#allocation6 + $0xf]] }
  0x69   :  { %v142_v16 = vstv %s985_s19  ;;  %v139_v18 = vmul.f32 %v138_v15, %v987_v1  ;;  %v149_v20 = vstv %s991_s21  ;;  %s1022_s30 = sld [smem:[#allocation7 + $0x6]]  ;;  %v147_v22 = vmul.f32 %v146_v19, %v983_v0  ;;  %s1031_s9 = sld [smem:[#allocation7 + $0x7]] }
  0x6a   :  { %v121_v21 = vadd.f32 %v120_v6, %v118_v13  ;;  %v150_v23 = vmul.f32 %v149_v20, %v987_v1  ;;  %v153_v24 = vstv %s993_s1  ;;  %v132_v25 = vadd.f32 %v131_v11, %v129_v17  ;;  %s1035_s3 = sld [smem:[#allocation9]]  ;;  %s1073_s13 = sld [smem:[#allocation9 + $0x1]] }
  0x6b   :  { %v140_v26 = vadd.f32 %v139_v18, %v136_v14  ;;  %v157_v27 = vstv %s995_s22  ;;  %v160_v28 = vstv %s998_s23  ;;  %s1037_s5 = sld [smem:[#allocation9 + $0x8]]  ;;  %v168_v36 = vstv %s1004_s25  ;;  %s1075_s14 = sld [smem:[#allocation9 + $0x9]] }
  0x6c   :  { %v1039_v29 = vmax.f32 %v121_v21, 0.0  ;;  %v151_v30 = vadd.f32 %v150_v23, %v147_v22  ;;  %v158_v31 = vmul.f32 %v157_v27, %v983_v0  ;;  %v161_v32 = vmul.f32 %v160_v28, %v987_v1  ;;  %s1043_s2 = sld [smem:[#allocation9 + $0x10]]  ;;  %s1082_s15 = sld [smem:[#allocation9 + $0x11]] }
  0x6d   :  { %s1045_s4 = sld [smem:[#allocation9 + $0x18]]  ;;  %v1047_v33 = vmax.f32 %v132_v25, 0.0  ;;  %v143_v34 = vadd.f32 %v142_v16, %v140_v26  ;;  %v164_v35 = vstv %s1000_s24  ;;  %v169_v39 = vmul.f32 %v168_v36, %v983_v0  ;;  %s1084_s16 = sld [smem:[#allocation9 + $0x19]] }
  0x6e   :  { %v154_v37 = vadd.f32 %v153_v24, %v151_v30  ;;  %v162_v38 = vadd.f32 %v161_v32, %v158_v31  ;;  %v171_v40 = vstv %s1006_s26  ;;  %s1053_s10 = sld [smem:[#allocation9 + $0x20]]  ;;  %v175_v43 = vstv %s1011_s27  ;;  %s1090_s18 = sld [smem:[#allocation9 + $0x21]] }
  0x6f   :  { %s1055_s11 = sld [smem:[#allocation9 + $0x28]]  ;;  %v1057_v41 = vmax.f32 %v143_v34, 0.0  ;;  %v172_v42 = vmul.f32 %v171_v40, %v987_v1  ;;  %v179_v44 = vstv %s1013_s28  ;;  %v182_v48 = vstv %s1017_s29  ;;  %s1096_s19 = sld [smem:[#allocation9 + $0x29]] }
  0x70   :  { %v1062_v45 = vmax.f32 %v154_v37, 0.0  ;;  %v165_v46 = vadd.f32 %v164_v35, %v162_v38  ;;  %v180_v47 = vmul.f32 %v179_v44, %v983_v0  ;;  %s1066_s6 = sld [smem:[#allocation9 + $0x30]]  ;;  %v183_v50 = vmul.f32 %v182_v48, %v987_v1  ;;  %s1098_s20 = sld [smem:[#allocation9 + $0x31]] }
  0x71   :  { %s1068_s12 = sld [smem:[#allocation9 + $0x38]]  ;;  %v173_v49 = vadd.f32 %v172_v42, %v169_v39  ;;  %v186_v51 = vstv %s1022_s30  ;;  %v190_v52 = vstv %s1024_s8  ;;  %v193_v55 = vstv %s1029_s0  ;;  %s1106_s21 = sld [smem:[#allocation9 + $0x39]] }
  0x72   :  { %v1077_v53 = vmax.f32 %v165_v46, 0.0  ;;  %v191_v54 = vmul.f32 %v190_v52, %v983_v0  ;;  %v197_v56 = vstv %s1031_s9  ;;  %v184_v58 = vadd.f32 %v183_v50, %v180_v47  ;;  %s1088_s17 = sld [smem:[#allocation10]]  ;;  %s1108_s1 = sld [smem:[#allocation9 + $0x2]] }
  0x73   :  { %v176_v57 = vadd.f32 %v175_v43, %v173_v49  ;;  %v194_v59 = vmul.f32 %v193_v55, %v987_v1  ;;  %v201_v60 = vstv %s1035_s3  ;;  %v204_v62 = vstv %s1037_s5  ;;  %s1111_s22 = sld [smem:[#allocation9 + $0xa]]  ;;  %s1128_s26 = sld [smem:[#allocation10 + $0x1]] }
  0x74   :  { %v202_v61 = vmul.f32 %v201_v60, %v1039_v29  ;;  %v208_v63 = vstv %s1043_s2  ;;  %v212_v0 = vstv %s1045_s4  ;;  %v187_v3 = vadd.f32 %v186_v51, %v184_v58  ;;  %s1113_s23 = sld [smem:[#allocation9 + $0x12]]  ;;  %s1145_s29 = sld [smem:[#allocation9 + $0x3]] }
  0x75   :  { %v1100_v2 = vmax.f32 %v176_v57, 0.0  ;;  %v195_v1 = vadd.f32 %v194_v59, %v191_v54  ;;  %v205_v4 = vmul.f32 %v204_v62, %v1047_v33  ;;  %v209_v5 = vmul.f32 %v208_v63, %v1057_v41  ;;  %s1120_s24 = sld [smem:[#allocation9 + $0x1a]]  ;;  %s1151_s8 = sld [smem:[#allocation9 + $0xb]] }
  0x76   :  { %v216_v6 = vstv %s1053_s10  ;;  %v220_v7 = vstv %s1055_s11  ;;  %v213_v10 = vmul.f32 %v212_v0, %v1062_v45  ;;  %v1115_v11 = vmax.f32 %v187_v3, 0.0  ;;  %s1122_s25 = sld [smem:[#allocation9 + $0x22]]  ;;  %s1157_s0 = sld [smem:[#allocation9 + $0x13]] }
  0x77   :  { %v198_v8 = vadd.f32 %v197_v56, %v195_v1  ;;  %v206_v9 = vadd.f32 %v205_v4, %v202_v61  ;;  %v217_v12 = vmul.f32 %v216_v6, %v1077_v53  ;;  %v221_v13 = vmul.f32 %v220_v7, %v1100_v2  ;;  %s1134_s27 = sld [smem:[#allocation9 + $0x2a]]  ;;  %s1159_s9 = sld [smem:[#allocation9 + $0x1b]] }
  0x78   :  { %v224_v14 = vstv %s1066_s6  ;;  %v228_v17 = vstv %s1068_s12  ;;  %v236_v18 = vstv %s1073_s13  ;;  %v239_v20 = vstv %s1075_s14  ;;  %s1136_s28 = sld [smem:[#allocation9 + $0x32]]  ;;  %s1169_s5 = sld [smem:[#allocation9 + $0x23]] }
  0x79   :  { %v1124_v15 = vmax.f32 %v198_v8, 0.0  ;;  %v210_v16 = vadd.f32 %v209_v5, %v206_v9  ;;  %v237_v19 = vmul.f32 %v236_v18, %v1039_v29  ;;  %v243_v21 = vstv %s1082_s15  ;;  %s1149_s30 = sld [smem:[#allocation9 + $0x3a]]  ;;  %s1171_s2 = sld [smem:[#allocation9 + $0x2b]] }
  0x7a   :  { %v247_v22 = vstv %s1084_s16  ;;  %v232_v24 = vstv %s1088_s17  ;;  %v240_v25 = vmul.f32 %v239_v20, %v1047_v33  ;;  %v244_v26 = vmul.f32 %v243_v21, %v1057_v41  ;;  %s1163_s3 = sld [smem:[#allocation10 + $0x2]]  ;;  %s1179_s4 = sld [smem:[#allocation9 + $0x33]] }
  0x7b   :  { %v214_v23 = vadd.f32 %v213_v10, %v210_v16  ;;  %v225_v27 = vmul.f32 %v224_v14, %v1115_v11  ;;  %v251_v28 = vstv %s1090_s18  ;;  %v255_v30 = vstv %s1096_s19  ;;  %s1181_s10 = sld [smem:[#allocation9 + $0x3b]]  ;;  %s1186_s6 = sld [smem:[#allocation9 + $0x4]] }
  0x7c   :  { %v259_v31 = vstv %s1098_s20  ;;  %v229_v34 = vmul.f32 %v228_v17, %v1124_v15  ;;  %v241_v35 = vadd.f32 %v240_v25, %v237_v19  ;;  %v248_v36 = vmul.f32 %v247_v22, %v1062_v45  ;;  %s1184_s11 = sld [smem:[#allocation10 + $0x3]]  ;;  %s1192_s12 = sld [smem:[#allocation9 + $0xc]] }
  0x7d   :  { %v218_v32 = vadd.f32 %v217_v12, %v214_v23  ;;  %v252_v37 = vmul.f32 %v251_v28, %v1077_v53  ;;  %v256_v38 = vmul.f32 %v255_v30, %v1100_v2  ;;  %v260_v39 = vmul.f32 %v259_v31, %v1115_v11  ;;  %s1194_s13 = sld [smem:[#allocation9 + $0x14]]  ;;  %s1223_s19 = sld [smem:[#allocation9 + $0x5]] }
  0x7e   :  { %v271_v40 = vstv %s1108_s1  ;;  %v245_v43 = vadd.f32 %v244_v26, %v241_v35  ;;  %v263_v44 = vstv %s1106_s21  ;;  %v274_v47 = vstv %s1111_s22  ;;  %s1201_s14 = sld [smem:[#allocation9 + $0x1c]]  ;;  %s1227_s20 = sld [smem:[#allocation9 + $0xd]] }
  0x7f   :  { %v222_v42 = vadd.f32 %v221_v13, %v218_v32  ;;  %v272_v46 = vmul.f32 %v271_v40, %v1039_v29  ;;  %v278_v48 = vstv %s1113_s23  ;;  %v282_v49 = vstv %s1120_s24  ;;  %s1203_s15 = sld [smem:[#allocation9 + $0x24]]  ;;  %s1232_s21 = sld [smem:[#allocation9 + $0x15]] }
  0x80   :  { %v286_v50 = vstv %s1122_s25  ;;  %v249_v52 = vadd.f32 %v248_v36, %v245_v43  ;;  %v275_v54 = vmul.f32 %v274_v47, %v1047_v33  ;;  %v279_v55 = vmul.f32 %v278_v48, %v1057_v41  ;;  %s1207_s16 = sld [smem:[#allocation9 + $0x2c]]  ;;  %s1234_s1 = sld [smem:[#allocation9 + $0x1d]] }
  0x81   :  { %v226_v51 = vadd.f32 %v225_v27, %v222_v42  ;;  %v264_v56 = vmul.f32 %v263_v44, %v1124_v15  ;;  %v267_v57 = vstv %s1128_s26  ;;  %v290_v58 = vstv %s1134_s27  ;;  %s1213_s17 = sld [smem:[#allocation9 + $0x34]]  ;;  %s1240_s23 = sld [smem:[#allocation9 + $0x25]] }
  0x82   :  { %v294_v59 = vstv %s1136_s28  ;;  %v253_v61 = vadd.f32 %v252_v37, %v249_v52  ;;  %v276_v62 = vadd.f32 %v275_v54, %v272_v46  ;;  %v283_v63 = vmul.f32 %v282_v49, %v1062_v45  ;;  %s1215_s18 = sld [smem:[#allocation9 + $0x3c]]  ;;  %s1246_s24 = sld [smem:[#allocation9 + $0x2d]] }
  0x83   :  { %v230_v60 = vadd.f32 %v229_v34, %v226_v51  ;;  %v287_v0 = vmul.f32 %v286_v50, %v1077_v53  ;;  %v291_v3 = vmul.f32 %v290_v58, %v1100_v2  ;;  %v295_v1 = vmul.f32 %v294_v59, %v1115_v11  ;;  %s1238_s22 = sld [smem:[#allocation10 + $0x4]]  ;;  %s1250_s25 = sld [smem:[#allocation9 + $0x35]] }
  0x84   :  { %v306_v4 = vstv %s1145_s29  ;;  %v257_v6 = vadd.f32 %v256_v38, %v253_v61  ;;  %v280_v7 = vadd.f32 %v279_v55, %v276_v62  ;;  %v298_v8 = vstv %s1149_s30  ;;  %s1252_s26 = sld [smem:[#allocation9 + $0x3d]]  ;;  %s1260_s27 = sld [smem:[#allocation9 + $0x6]] }
  0x85   :  { %v233_v5 = vadd.f32 %v232_v24, %v230_v60  ;;  %v307_v9 = vmul.f32 %v306_v4, %v1039_v29  ;;  %v309_v10 = vstv %s1151_s8  ;;  %v313_v12 = vstv %s1157_s0  ;;  %s1262_s28 = sld [smem:[#allocation9 + $0xe]] }
  0x86   :  { %v317_v13 = vstv %s1159_s9  ;;  %v261_v14 = vadd.f32 %v260_v39, %v257_v6  ;;  %v284_v16 = vadd.f32 %v283_v63, %v280_v7  ;;  %v302_v17 = vstv %s1163_s3  ;;  %s1267_s29 = sld [smem:[#allocation9 + $0x16]]  ;;  %s1284_s9 = sld [smem:[#allocation10 + $0x5]] }
  0x87   :  { %v310_v18 = vmul.f32 %v309_v10, %v1047_v33  ;;  %v299_v19 = vmul.f32 %v298_v8, %v1124_v15  ;;  %v314_v20 = vmul.f32 %v313_v12, %v1057_v41  ;;  %v321_v21 = vstv %s1169_s5  ;;  %s1269_s30 = sld [smem:[#allocation9 + $0x1e]]  ;;  %s1295_s5 = sld [smem:[#allocation9 + $0x7]] }
  0x88   :  { %v325_v22 = vstv %s1171_s2  ;;  %v265_v23 = vadd.f32 %v264_v56, %v261_v14  ;;  %v288_v24 = vadd.f32 %v287_v0, %v284_v16  ;;  %v318_v26 = vmul.f32 %v317_v13, %v1062_v45  ;;  %s1274_s8 = sld [smem:[#allocation9 + $0x26]]  ;;  %s1297_s2 = sld [smem:[#allocation9 + $0xf]] }
  0x89   :  { %v311_v25 = vadd.f32 %v310_v18, %v307_v9  ;;  %v1218_v27 = vmax.f32 %v233_v5, 0.0  ;;  %v322_v28 = vmul.f32 %v321_v21, %v1077_v53  ;;  %v326_v30 = vmul.f32 %v325_v22, %v1100_v2  ;;  %s1276_s0 = sld [smem:[#allocation9 + $0x2e]] }
  0x8a   :  { %v329_v31 = vstv %s1179_s4  ;;  %v292_v32 = vadd.f32 %v291_v3, %v288_v24  ;;  %v333_v35 = vstv %s1181_s10  ;;  %v337_v36 = vstv %s1184_s11  ;;  %s1286_s3 = sld [smem:[#allocation9 + $0x36]]  ;;  %s1310_s11 = sld [smem:[#allocation9 + $0x17]] }
  0x8b   :  { %v315_v34 = vadd.f32 %v314_v20, %v311_v25  ;;  %v268_v37 = vadd.f32 %v267_v57, %v265_v23  ;;  %v341_v38 = vstv %s1186_s6  ;;  %v344_v39 = vstv %s1192_s12  ;;  %s1302_s4 = sld [smem:[#allocation9 + $0x3e]]  ;;  %s1312_s6 = sld [smem:[#allocation9 + $0x1f]] }
  0x8c   :  { %v348_v40 = vstv %s1194_s13  ;;  %v296_v42 = vadd.f32 %v295_v1, %v292_v32  ;;  %v330_v44 = vmul.f32 %v329_v31, %v1115_v11  ;;  %v342_v46 = vmul.f32 %v341_v38, %v1039_v29  ;;  %s1304_s10 = sld [smem:[#allocation10 + $0x6]]  ;;  %s1316_s12 = sld [smem:[#allocation9 + $0x27]] }
  0x8d   :  { %v319_v43 = vadd.f32 %v318_v26, %v315_v34  ;;  %v345_v47 = vmul.f32 %v344_v39, %v1047_v33  ;;  %v349_v48 = vmul.f32 %v348_v40, %v1057_v41  ;;  %v352_v49 = vstv %s1201_s14  ;;  %s1322_s13 = sld [smem:[#allocation9 + $0x2f]] }
  0x8e   :  { %v356_v50 = vstv %s1203_s15  ;;  %v300_v51 = vadd.f32 %v299_v19, %v296_v42  ;;  %v334_v54 = vmul.f32 %v333_v35, %v1124_v15  ;;  %v353_v55 = vmul.f32 %v352_v49, %v1062_v45  ;;  %s1324_s14 = sld [smem:[#allocation9 + $0x37]] }
  0x8f   :  { %v323_v52 = vadd.f32 %v322_v28, %v319_v43  ;;  %v346_v56 = vadd.f32 %v345_v47, %v342_v46  ;;  %v360_v57 = vstv %s1207_s16  ;;  %v364_v58 = vstv %s1213_s17  ;;  %s1334_s15 = sld [smem:[#allocation9 + $0x3f]]  ;;  %s1336_s16 = sld [smem:[#allocation12]] }
  0x90   :  { %v368_v59 = vstv %s1215_s18  ;;  %v1257_v60 = vmax.f32 %v268_v37, 0.0  ;;  %v303_v61 = vadd.f32 %v302_v17, %v300_v51  ;;  %v357_v63 = vmul.f32 %v356_v50, %v1077_v53  ;;  %s1341_s17 = sld [smem:[#allocation12 + $0x4]]  ;;  %s1343_s18 = sld [smem:[#allocation12 + $0x8]] }
  0x91   :  { %v327_v62 = vadd.f32 %v326_v30, %v323_v52  ;;  %v350_v0 = vadd.f32 %v349_v48, %v346_v56  ;;  %v361_v3 = vmul.f32 %v360_v57, %v1100_v2  ;;  %v365_v1 = vmul.f32 %v364_v58, %v1115_v11 }
  0x92   :  { %v376_v4 = vstv %s1223_s19  ;;  %v369_v6 = vmul.f32 %v368_v59, %v1124_v15  ;;  %v379_v8 = vstv %s1227_s20  ;;  %v383_v12 = vstv %s1232_s21  ;;  %s1347_s19 = sld [smem:[#allocation10 + $0x7]]  ;;  %s1349_s20 = sld [smem:[#allocation12 + $0xc]] }
  0x93   :  { %v331_v5 = vadd.f32 %v330_v44, %v327_v62  ;;  %v377_v7 = vmul.f32 %v376_v4, %v1039_v29  ;;  %v354_v9 = vadd.f32 %v353_v55, %v350_v0  ;;  %v380_v10 = vmul.f32 %v379_v8, %v1047_v33  ;;  %s1355_s21 = sld [smem:[#allocation12 + $0x10]] }
  0x94   :  { %v387_v13 = vstv %s1234_s1  ;;  %v372_v16 = vstv %s1238_s22  ;;  %v384_v17 = vmul.f32 %v383_v12, %v1057_v41  ;;  %v391_v18 = vstv %s1240_s23  ;;  %s1357_s1 = sld [smem:[#allocation12 + $0x14]]  ;;  %s1364_s22 = sld [smem:[#allocation12 + $0x18]] }
  0x95   :  { %v335_v14 = vadd.f32 %v334_v54, %v331_v5  ;;  %v358_v19 = vadd.f32 %v357_v63, %v354_v9  ;;  %v381_v20 = vadd.f32 %v380_v10, %v377_v7  ;;  %v388_v21 = vmul.f32 %v387_v13, %v1062_v45  ;;  %s1369_s23 = sld [smem:[#allocation12 + $0x1]] }
  0x96   :  { %v395_v22 = vstv %s1246_s24  ;;  %v1290_v23 = vmax.f32 %v303_v61, 0.0  ;;  %v392_v24 = vmul.f32 %v391_v18, %v1077_v53  ;;  %v399_v25 = vstv %s1250_s25  ;;  %s1371_s24 = sld [smem:[#allocation12 + $0x5]]  ;;  %s1376_s25 = sld [smem:[#allocation12 + $0x9]] }
  0x97   :  { %v403_v26 = vstv %s1252_s26  ;;  %v338_v28 = vadd.f32 %v337_v36, %v335_v14  ;;  %v362_v30 = vadd.f32 %v361_v3, %v358_v19  ;;  %v385_v31 = vadd.f32 %v384_v17, %v381_v20  ;;  %s1382_s26 = sld [smem:[#allocation12 + $0x1c]] }
  0x98   :  { %v396_v32 = vmul.f32 %v395_v22, %v1100_v2  ;;  %v400_v34 = vmul.f32 %v399_v25, %v1115_v11  ;;  %v404_v35 = vmul.f32 %v403_v26, %v1124_v15  ;;  %v411_v37 = vstv %s1260_s27  ;;  %s1384_s27 = sld [smem:[#allocation12 + $0xd]] }
  0x99   :  { %v414_v38 = vstv %s1262_s28  ;;  %v366_v36 = vadd.f32 %v365_v1, %v362_v30  ;;  %v389_v39 = vadd.f32 %v388_v21, %v385_v31  ;;  %v412_v40 = vmul.f32 %v411_v37, %v1039_v29  ;;  %s1389_s28 = sld [smem:[#allocation12 + $0x11]] }
  0x9a   :  { %v415_v42 = vmul.f32 %v414_v38, %v1047_v33  ;;  %v418_v43 = vstv %s1267_s29  ;;  %v422_v44 = vstv %s1269_s30  ;;  %v426_v46 = vstv %s1274_s8  ;;  %s1394_s29 = sld [smem:[#allocation13]]  ;;  %s1396_s30 = sld [smem:[#allocation12 + $0x15]] }
  0x9b   :  { %v430_v47 = vstv %s1276_s0  ;;  %v370_v48 = vadd.f32 %v369_v6, %v366_v36  ;;  %v393_v49 = vadd.f32 %v392_v24, %v389_v39  ;;  %v419_v51 = vmul.f32 %v418_v43, %v1057_v41  ;;  %s1401_s8 = sld [smem:[#allocation12 + $0x19]]  ;;  %s1405_s0 = sld [smem:[#allocation12 + $0x1d]] }
  0x9c   :  { %v416_v50 = vadd.f32 %v415_v42, %v412_v40  ;;  %v1327_v52 = vmax.f32 %v338_v28, 0.0  ;;  %v407_v54 = vstv %s1284_s9  ;;  %v423_v55 = vmul.f32 %v422_v44, %v1062_v45  ;;  %s1407_s9 = sld [smem:[#allocation12 + $0x2]] }
  0x9d   :  { %v434_v56 = vstv %s1286_s3  ;;  %v397_v57 = vadd.f32 %v396_v32, %v393_v49  ;;  %v427_v59 = vmul.f32 %v426_v46, %v1077_v53  ;;  %v431_v61 = vmul.f32 %v430_v47, %v1100_v2  ;;  %s1412_s3 = sld [smem:[#allocation12 + $0x6]] }
  0x9e   :  { %v420_v58 = vadd.f32 %v419_v51, %v416_v50  ;;  %v373_v62 = vadd.f32 %v372_v16, %v370_v48  ;;  %v435_v63 = vmul.f32 %v434_v56, %v1115_v11  ;;  %v446_v0 = vstv %s1295_s5  ;;  %s1418_s5 = sld [smem:[#allocation12 + $0xa]] }
  0x9f   :  { %v449_v3 = vstv %s1297_s2  ;;  %v401_v1 = vadd.f32 %v400_v34, %v397_v57  ;;  %v438_v5 = vstv %s1302_s4  ;;  %v442_v6 = vstv %s1304_s10  ;;  %s1420_s2 = sld [smem:[#allocation12 + $0xe]]  ;;  %s1428_s4 = sld [smem:[#allocation12 + $0x12]] }
  0xa0   :  { %v424_v4 = vadd.f32 %v423_v55, %v420_v58  ;;  %v447_v7 = vmul.f32 %v446_v0, %v1039_v29  ;;  %v450_v8 = vmul.f32 %v449_v3, %v1047_v33  ;;  %v453_v9 = vstv %s1310_s11  ;;  %s1430_s10 = sld [smem:[#allocation12 + $0x16]]  ;;  %s1437_s11 = sld [smem:[#allocation13 + $0x1]] }
  0xa1   :  { %v457_v10 = vstv %s1312_s6  ;;  %v405_v12 = vadd.f32 %v404_v35, %v401_v1  ;;  %v454_v14 = vmul.f32 %v453_v9, %v1057_v41  ;;  %v461_v18 = vstv %s1316_s12  ;;  %s1439_s6 = sld [smem:[#allocation12 + $0x1a]]  ;;  %s1443_s12 = sld [smem:[#allocation12 + $0x1e]] }
  0xa2   :  { %v428_v13 = vadd.f32 %v427_v59, %v424_v4  ;;  %v458_v16 = vmul.f32 %v457_v10, %v1062_v45  ;;  %v451_v17 = vadd.f32 %v450_v8, %v447_v7  ;;  %v465_v19 = vstv %s1322_s13  ;;  %s1445_s13 = sld [smem:[#allocation12 + $0x3]] }
  0xa3   :  { %v469_v20 = vstv %s1324_s14  ;;  %v1366_v29 = vmax.f32 %v373_v62, 0.0  ;;  %v408_v33 = vadd.f32 %v407_v54, %v405_v12  ;;  %v439_v22 = vmul.f32 %v438_v5, %v1124_v15  ;;  %s1450_s14 = sld [smem:[#allocation12 + $0x7]] }
  0xa4   :  { %v432_v21 = vadd.f32 %v431_v61, %v428_v13  ;;  %v455_v41 = vadd.f32 %v454_v14, %v451_v17  ;;  %v462_v45 = vmul.f32 %v461_v18, %v1077_v53  ;;  %v466_v24 = vmul.f32 %v465_v19, %v1100_v2 }
  0xa5   :  { %v470_v25 = vmul.f32 %v469_v20, %v1115_v11  ;;  %v1378_v26 = vmax.f32 %v408_v33, 0.0  ;;  %v473_v30 = vstv %s1334_s15  ;;  %v481_v31 = vstv %s1336_s16  ;;  %s1452_s15 = sld [smem:[#allocation12 + $0xb]]  ;;  %s1461_s16 = sld [smem:[#allocation12 + $0xf]] }
  0xa6   :  { %v436_v28 = vadd.f32 %v435_v63, %v432_v21  ;;  %v459_v53 = vadd.f32 %v458_v16, %v455_v41  ;;  %v482_v2 = vmul.f32 %v481_v31, %v1218_v27  ;;  %v484_v32 = vstv %s1341_s17  ;;  %s1463_s17 = sld [smem:[#allocation12 + $0x13]] }
  0xa7   :  { %v488_v11 = vstv %s1343_s18  ;;  %v485_v35 = vmul.f32 %v484_v32, %v1257_v60  ;;  %v492_v38 = vstv %s1349_s20  ;;  %v477_v39 = vstv %s1347_s19  ;;  %s1471_s18 = sld [smem:[#allocation12 + $0x17]]  ;;  %s1477_s19 = sld [smem:[#allocation12 + $0x1b]] }
  0xa8   :  { %v440_v34 = vadd.f32 %v439_v22, %v436_v28  ;;  %v489_v37 = vmul.f32 %v488_v11, %v1290_v23  ;;  %v463_v36 = vadd.f32 %v462_v45, %v459_v53  ;;  %v496_v40 = vstv %s1355_s21  ;;  %s1481_s20 = sld [smem:[#allocation13 + $0x2]]  ;;  %s1486_s21 = sld [smem:[#allocation12 + $0x1f]] }
  0xa9   :  { %v500_v42 = vstv %s1357_s1  ;;  %v474_v44 = vmul.f32 %v473_v30, %v1124_v15  ;;  %v486_v46 = vadd.f32 %v485_v35, %v482_v2  ;;  %v493_v47 = vmul.f32 %v492_v38, %v1327_v52  ;;  %s764_s1 = sld [smem:[#allocation13 + $0x3]] }
  0xaa   :  { %v443_v43 = vadd.f32 %v442_v6, %v440_v34  ;;  %v467_v48 = vadd.f32 %v466_v24, %v463_v36  ;;  %v497_v49 = vmul.f32 %v496_v40, %v1366_v29  ;;  %v501_v50 = vmul.f32 %v500_v42, %v1378_v26 }
  0xab   :  { %v504_v51 = vstv %s1364_s22  ;;  %v490_v15 = vadd.f32 %v489_v37, %v486_v46  ;;  %v515_v55 = vstv %s1369_s23  ;;  %v518_v56 = vstv %s1371_s24  ;;  %s908_s22 = smov [#allocation15]  }
  0xac   :  { %v1414_v54 = vmax.f32 %v443_v43, 0.0  ;;  %v471_v57 = vadd.f32 %v470_v25, %v467_v48  ;;  %v516_v58 = vmul.f32 %v515_v55, %v1218_v27  ;;  %v519_v59 = vmul.f32 %v518_v56, %v1257_v60  ;;  %s626_s23 = sshll.u32 %s908_s22, 4  ;;  %s627_s23 = int_to_ptr.vmem [resolvable:$true] %s626_s23 }
  0xad   :  { %v522_v61 = vstv %s1376_s25  ;;  %v494_v62 = vadd.f32 %v493_v47, %v490_v15  ;;  %v508_v63 = vstv %s1382_s26  ;;  %v526_v3 = vstv %s1384_s27  ;;  %s867_s24 = scalar_lea.vmem %s627_s23, 64  ;;  %p872_p11 = scmp.lt.s32.totalorder %s627_s23, %s627_s23 }
  0xae   :  { %v523_v0 = vmul.f32 %v522_v61, %v1290_v23  ;;  %v475_v1 = vadd.f32 %v474_v44, %v471_v57  ;;  %v520_v4 = vadd.f32 %v519_v59, %v516_v58  ;;  %v527_v5 = vmul.f32 %v526_v3, %v1327_v52  ;;  %p868_p10 = scmp.ne.s32.totalorder %s627_s23, %s867_s24  ;;  %p873_p12 = scmp.lt.s32.totalorder %s867_s24, %s867_s24 }
  0xaf   :  { %v530_v6 = vstv %s1389_s28  ;;  %v498_v7 = vadd.f32 %v497_v49, %v494_v62  ;;  %v505_v8 = vmul.f32 %v504_v51, %v1414_v54  ;;  %v512_v9 = vstv %s1394_s29 }
  0xb0   :  { %v534_v10 = vstv %s1396_s30  ;;  %v478_v12 = vadd.f32 %v477_v39, %v475_v1  ;;  %v524_v13 = vadd.f32 %v523_v0, %v520_v4  ;;  %v531_v14 = vmul.f32 %v530_v6, %v1366_v29  ;;  %p874_p13 = por %p873_p12, %p872_p11 }
  0xb1   :  { %v538_v16 = vstv %s1401_s8  ;;  %v502_v17 = vadd.f32 %v501_v50, %v498_v7  ;;  %v535_v18 = vmul.f32 %v534_v10, %v1378_v26  ;;  %v542_v19 = vstv %s1405_s0 }
  0xb2   :  { %v549_v20 = vstv %s1407_s9  ;;  %v1454_v33 = vmax.f32 %v478_v12, 0.0  ;;  %v528_v21 = vadd.f32 %v527_v5, %v524_v13  ;;  %v552_v41 = vstv %s1412_s3  ;;  %p875_p0 = pnand %p874_p13, %p868_p10 }
  0xb3   :  { %v550_v22 = vmul.f32 %v549_v20, %v1218_v27  ;;  %v506_v45 = vadd.f32 %v505_v8, %v502_v17  ;;  %v553_v24 = vmul.f32 %v552_v41, %v1257_v60  ;;  %v556_v25 = vstv %s1418_s5 }
  0xb4   :  { %v560_v28 = vstv %s1420_s2  ;;  %v509_v30 = vmul.f32 %v508_v63, %v1454_v33  ;;  %v532_v31 = vadd.f32 %v531_v14, %v528_v21  ;;  %v539_v53 = vmul.f32 %v538_v16, %v1414_v54 }
  0xb5   :  { %v557_v2 = vmul.f32 %v556_v25, %v1290_v23  ;;  %v554_v32 = vadd.f32 %v553_v24, %v550_v22  ;;  %v561_v11 = vmul.f32 %v560_v28, %v1327_v52  ;;  %v564_v34 = vstv %s1428_s4 }
  0xb6   :  { %v568_v35 = vstv %s1430_s10  ;;  %v510_v37 = vadd.f32 %v509_v30, %v506_v45  ;;  %v536_v38 = vadd.f32 %v535_v18, %v532_v31  ;;  %v543_v36 = vmul.f32 %v542_v19, %v1454_v33 }
  0xb7   :  { %v546_v39 = vstv %s1437_s11  ;;  %v558_v40 = vadd.f32 %v557_v2, %v554_v32  ;;  %v565_v42 = vmul.f32 %v564_v34, %v1366_v29  ;;  %v569_v43 = vmul.f32 %v568_v35, %v1378_v26 }
  0xb8   :  { %v513_v44 = vadd.f32 %v512_v9, %v510_v37  ;;  %v540_v46 = vadd.f32 %v539_v53, %v536_v38  ;;  %v572_v47 = vstv %s1439_s6  ;;  %v576_v48 = vstv %s1443_s12 }
  0xb9   :  { %v562_v49 = vadd.f32 %v561_v11, %v558_v40  ;;  %v583_v50 = vstv %s1445_s13  ;;  %v586_v51 = vstv %s1450_s14  ;;  %v590_v15 = vstv %s1452_s15 }
  0xba   :  { %v544_v55 = vadd.f32 %v543_v36, %v540_v46  ;;  %v584_v56 = vmul.f32 %v583_v50, %v1218_v27  ;;  %v587_v57 = vmul.f32 %v586_v51, %v1257_v60  ;;  %v591_v58 = vmul.f32 %v590_v15, %v1290_v23  ;;  %616 = vst [vmem:[#allocation15] sm:$0x1] %v513_v44 }
  0xbb   :  { %v566_v59 = vadd.f32 %v565_v42, %v562_v49  ;;  %v573_v61 = vmul.f32 %v572_v47, %v1414_v54  ;;  %v594_v62 = vstv %s1461_s16  ;;  %v598_v63 = vstv %s1463_s17 }
  0xbc   :  { %v547_v0 = vadd.f32 %v546_v39, %v544_v55  ;;  %v588_v3 = vadd.f32 %v587_v57, %v584_v56  ;;  %v595_v1 = vmul.f32 %v594_v62, %v1327_v52  ;;  %v577_v27 = vmul.f32 %v576_v48, %v1454_v33 }
  0xbd   :  { %v570_v4 = vadd.f32 %v569_v43, %v566_v59  ;;  %v602_v5 = vstv %s1471_s18  ;;  %v599_v23 = vmul.f32 %v598_v63, %v1366_v29  ;;  %v606_v7 = vstv %s1477_s19 }
  0xbe   :  { %v592_v60 = vadd.f32 %v591_v58, %v588_v3  ;;  %617 = vst [vmem:[#allocation15 + $0x1] sm:$0x1] %v547_v0  ;;  %v580_v8 = vstv %s1481_s20  ;;  %v603_v10 = vmul.f32 %v602_v5, %v1378_v26  ;;  %v610_v13 = vstv %s1486_s21 }
  0xbf   :  { %v574_v6 = vadd.f32 %v573_v61, %v570_v4  ;;  %v607_v52 = vmul.f32 %v606_v7, %v1414_v54  ;;  %v611_v18 = vmul.f32 %v610_v13, %v1454_v33  ;;  %v614_v29 = vstv %s764_s1 }
  0xc0   :  { %v596_v9 = vadd.f32 %v595_v1, %v592_v60 }
  0xc1   :  { %v578_v12 = vadd.f32 %v577_v27, %v574_v6 }
  0xc2   :  { %v600_v14 = vadd.f32 %v599_v23, %v596_v9 }
  0xc3   :  { %v581_v16 = vadd.f32 %v580_v8, %v578_v12 }
  0xc4   :  { %v604_v17 = vadd.f32 %v603_v10, %v600_v14 }
  0xc5   :  { %618 = vst [vmem:[#allocation15 + $0x2] sm:$0x1] %v581_v16 }
  0xc6   :  { %v608_v19 = vadd.f32 %v607_v52, %v604_v17 }
  0xc8   :  { %v612_v20 = vadd.f32 %v611_v18, %v608_v19 }
  0xca   :  { %v615_v21 = vadd.f32 %v614_v29, %v612_v20 }
  0xcc   :  { %619 = vst [vmem:[#allocation15 + $0x3] sm:$0x1] %v615_v21 }
  0xcd   :  { %878 = shalt.err (!%p875_p0)
}
  0xce   :  { %s879_s27 = scalar_lea.hbm %s1523_s7, 64 }
  0xcf   :  { %p880_p1 = scmp.ne.s32.totalorder %s1523_s7, %s879_s27  ;;  %p883_p2 = scmp.lt.u32.totalorder %s879_s27, %s1523_s7 }
  0xd1   :  { %p885_p3 = pnand %p883_p2, %p880_p1 }
  0xd3   :  { %888 = shalt.err (!%p885_p3)
}
  0xd4   :  { %629 = dma.vmem_to_hbm [thread:$0]  %s627_s23, 64, %s1523_s7, [#allocation4]  }
  0xd5   :  { %899 = dma.done.wait [#allocation4], 64  }
  0xd6   :  { %900 = vsyncadd [#allocation4], 4294967232 }
  0xd7   :  { %633 = vsyncpa [#allocation3], 1 }
  0xd8   :  { %634 = vsyncpa [#allocation4], 1 }
  0xd9   :  { %635 = vsyncpa [#allocation5], 1 }
  0xda   :  { %636 = vsyncpa [#allocation8], 1 }
  0xdb   :  { %637 = vsyncpa [#allocation11], 1 }
  0xdc   :  { %638 = vsyncpa [#allocation14], 1 }

</bundles_post_ra>
